<compile_context>
chip_gen: v7x
topology: tpu7x:2x2x1
jax: 0.10.0
libtpu: 0.0.40
codegen_flags: <defaults>
</compile_context>

<pallas_src>
import functools
import math

import jax
import jax.numpy as jnp
from jax.experimental import pallas as pl
from jax.experimental.pallas import tpu as pltpu

EPS = 1e-5
LANE = 128


def _vmem_limit_bytes():
    """Scoped-VMEM limit: ~75% of physical per-core VMEM, capped at 96 MiB.
    v5e/v6e (128 MiB) -> 96 MiB, v7x (64 MiB) -> 48 MiB, fallback -> 48 MiB."""
    cap = None
    try:
        cap = getattr(pltpu.get_tpu_info(), "vmem_capacity_bytes", None)
    except Exception:
        cap = None
    if not cap:
        cap = 64 * 1024 * 1024
    return int(min(cap * 3 // 4, 96 * 1024 * 1024))


def _pick_tp(ho, w, cin, coutp, vmem_limit, requested):
    """Pooled rows per grid step: largest divisor of Ho giving ~<=4096 matmul rows
    while the per-step working set stays comfortably inside the VMEM budget."""
    if requested is not None:
        tp = int(requested)
        assert ho % tp == 0, "pool_rows_per_tile must divide H//2"
        return tp
    target_m = 4096
    best = 1
    for t in range(1, ho + 1):
        if ho % t:
            continue
        m = 2 * t * w
        # rough per-step VMEM: f32 conv acc + relu/pool temps + bf16 im2col patch
        # + double-buffered output tile (image + weight buffers counted separately).
        work = (m * coutp * 4 * 3) + (m * 3 * cin * 2 * 2) + (2 * t * (w // 2) * coutp * 4)
        if work > vmem_limit // 2:
            break
        if m <= max(target_m, 2 * w):
            best = t
    return best


def _conv_rows(x_ref, w_ref, row0, th2, w, cin):
    """3x3 'same' conv of conv rows [row0, row0+th2) of one padded NHWC image.

    x_ref : (1, H+2, W+2, Cin)  padded image (bf16), resident in VMEM
    w_ref : (3, 3*Cin, Coutp)   weights grouped by kh, rows (kw, cin)-major
    Returns (th2*w, Coutp) float32 conv output (no bias).

    kh-grouped: three K=3*Cin matmuls accumulated in f32 keep the materialized
    im2col patch at (M, 3*Cin) instead of (M, 9*Cin).
    """
    acc = None
    for kh in range(3):
        rows = x_ref[0, pl.ds(row0 + kh, th2)]                       # (th2, W+2, Cin)
        pat = jnp.concatenate([rows[:, kw:kw + w, :] for kw in range(3)], axis=-1)
        pat = pat.reshape(th2 * w, 3 * cin)                          # (M, 3*Cin)
        part = jnp.dot(pat, w_ref[kh], preferred_element_type=jnp.float32)
        acc = part if acc is None else acc + part
    return acc


def _stats_kernel(x_ref, w_ref, stats_ref, *, th2, w, cin):
    """Per-tile conv + per-channel sum / sum-of-squares partials (2 rows only)."""
    row0 = pl.program_id(1) * th2
    conv = _conv_rows(x_ref, w_ref, row0, th2, w, cin)               # (M, Coutp) f32
    s = jnp.sum(conv, axis=0, keepdims=True)
    ss = jnp.sum(conv * conv, axis=0, keepdims=True)
    stats_ref[0, 0] = jnp.concatenate([s, ss], axis=0)               # (2, Coutp)


def _bn_relu_pool_kernel(x_ref, w_ref, shift_ref, o_ref, *, th2, w, cin, tp, wo):
    """Per-tile conv (BN scale pre-folded into weights) + shift + ReLU + MaxPool2d(2)."""
    row0 = pl.program_id(1) * th2
    conv = _conv_rows(x_ref, w_ref, row0, th2, w, cin)               # (M, Coutp) f32
    y = jnp.maximum(conv + shift_ref[...], 0.0)
    y = y.reshape(tp, 2, w, -1).max(axis=1)                          # pool row pairs
    y = y.reshape(tp, wo, 2, -1).max(axis=2)                         # pool col pairs
    o_ref[0] = y.astype(o_ref.dtype)


def conv_block_forward(x, weight, bias, gamma, beta, *,
                       pool_rows_per_tile=None,
                       compute_dtype=jnp.bfloat16,
                       out_dtype=jnp.float32,
                       eps=EPS):
    """x: (N, Cin, H, W) f32; weight: (Cout, Cin, 3, 3); bias/gamma/beta: (Cout,).
    Returns (N, Cout, H//2, W//2) = MaxPool2(ReLU(BN_train(Conv3x3_pad1(x))))."""
    del bias  # cancels exactly under training-mode BatchNorm (mean subtraction)
    N, Cin, H, W = x.shape
    Cout = weight.shape[0]
    assert weight.shape == (Cout, Cin, 3, 3)
    assert H % 2 == 0 and W % 2 == 0, "MaxPool2d(2) expects even H, W"
    Ho, Wo = H // 2, W // 2
    Coutp = ((Cout + LANE - 1) // LANE) * LANE                       # lane-dense width

    vmem_limit = _vmem_limit_bytes()
    tp = _pick_tp(Ho, W, Cin, Coutp, vmem_limit, pool_rows_per_tile)
    th2 = 2 * tp
    n_tiles = Ho // tp

    # ---- layout prep: one cheap pad+transpose; NO gather / tile materialization -----
    # TODO(synk): for very large H*W*Cin the per-image block may not fit VMEM; switch
    # x to memory_space=pl.ANY + manual halo-window DMAs in that regime.
    xp = jnp.pad(jnp.transpose(x, (0, 2, 3, 1)),
                 ((0, 0), (1, 1), (1, 1), (0, 0))).astype(compute_dtype)

    # Weights: (Cout, Cin, 3, 3) -> (3[kh], 3*Cin[(kw,cin)], Coutp), Cout lane-padded.
    wmat = jnp.transpose(weight, (2, 3, 1, 0)).reshape(9 * Cin, Cout).astype(jnp.float32)
    wmat = jnp.pad(wmat, ((0, 0), (0, Coutp - Cout)))
    w1 = wmat.astype(compute_dtype).reshape(3, 3 * Cin, Coutp)

    cparams = pltpu.CompilerParams(
        dimension_semantics=("parallel", "parallel"),
        vmem_limit_bytes=vmem_limit)

    grid = (N, n_tiles)
    x_spec = pl.BlockSpec((1, H + 2, W + 2, Cin), lambda n, i: (n, 0, 0, 0))
    w_spec = pl.BlockSpec((3, 3 * Cin, Coutp), lambda n, i: (0, 0, 0))

    # ---- phase 1: per-tile conv + per-channel sum / sumsq partials ------------------
    stats = pl.pallas_call(
        functools.partial(_stats_kernel, th2=th2, w=W, cin=Cin),
        out_shape=jax.ShapeDtypeStruct((N, n_tiles, 2, Coutp), jnp.float32),
        grid=grid,
        in_specs=[x_spec, w_spec],
        out_specs=pl.BlockSpec((1, 1, 2, Coutp), lambda n, i: (n, i, 0, 0)),
        compiler_params=cparams,
    )(xp, w1)

    # ---- global BN statistics (training mode, biased variance) ----------------------
    count = float(N * H * W)
    mean = jnp.sum(stats[:, :, 0, :], axis=(0, 1)) / count
    # E[x^2]-mean^2 in f32, clamped; self-consistent with the phase-2 bf16 conv.
    var = jnp.maximum(jnp.sum(stats[:, :, 1, :], axis=(0, 1)) / count - mean * mean, 0.0)
    gamma_p = jnp.pad(gamma.astype(jnp.float32), (0, Coutp - Cout))
    beta_p = jnp.pad(beta.astype(jnp.float32), (0, Coutp - Cout))
    scale = gamma_p * jax.lax.rsqrt(var + eps)                       # (Coutp,)
    shift = (beta_p - mean * scale).reshape(1, Coutp)
    # Fold the BN scale into the phase-2 weights: the MXU absorbs it for free.
    w2 = (wmat * scale[None, :]).astype(compute_dtype).reshape(3, 3 * Cin, Coutp)

    # ---- phase 2: conv (recomputed) + shift + ReLU + MaxPool2, lane-dense output ----
    # TODO(synk): on v5e with Cin >= ~32 prefer store-and-consume of the bf16 conv
    # from phase 1 (its MXU/HBM ratio makes the recompute the bottleneck there).
    out = pl.pallas_call(
        functools.partial(_bn_relu_pool_kernel, th2=th2, w=W, cin=Cin, tp=tp, wo=Wo),
        out_shape=jax.ShapeDtypeStruct((N, Ho, Wo, Coutp), out_dtype),
        grid=grid,
        in_specs=[x_spec, w_spec,
                  pl.BlockSpec((1, Coutp), lambda n, i: (0, 0))],
        out_specs=pl.BlockSpec((1, tp, Wo, Coutp), lambda n, i: (n, i, 0, 0)),
        compiler_params=cparams,
    )(xp, w2, shift)

    out = out[..., :Cout]                                            # drop lane padding
    # NOTE: downstream NHWC/Pallas consumers should keep the lane-dense NHWC layout;
    # the transpose below only restores the PyTorch module's NCHW contract.
    return jnp.transpose(out, (0, 3, 1, 2)).astype(jnp.float32)


def reference_forward(x, weight, bias, gamma, beta):
    """Pure-JAX f32 reference (Conv + train-mode BN + ReLU + MaxPool2)."""
    conv = jax.lax.conv_general_dilated(
        x, weight, window_strides=(1, 1), padding=((1, 1), (1, 1)),
        dimension_numbers=("NCHW", "OIHW", "NCHW"))
    conv = conv + bias[None, :, None, None]
    mean = conv.mean(axis=(0, 2, 3), keepdims=True)
    var = ((conv - mean) ** 2).mean(axis=(0, 2, 3), keepdims=True)   # biased, like F.batch_norm
    y = (conv - mean) / jnp.sqrt(var + EPS)
    y = y * gamma[None, :, None, None] + beta[None, :, None, None]
    y = jnp.maximum(y, 0.0)
    N, C, H, W = y.shape
    return y.reshape(N, C, H // 2, 2, W // 2, 2).max(axis=(3, 5))


if __name__ == "__main__":
    # Small shapes consistent with ConvBlock(indim=4, outdim=8, pool=True, padding=1)
    N, Cin, H, W = 2, 4, 16, 16
    Cout = 8

    key = jax.random.PRNGKey(0)
    kx, kw, kb = jax.random.split(key, 3)

    x = jax.random.normal(kx, (N, Cin, H, W), dtype=jnp.float32)

    # init_layer: conv weight ~ N(0, sqrt(2 / (3*3*outdim)))
    w_std = math.sqrt(2.0 / float(3 * 3 * Cout))
    weight = jax.random.normal(kw, (Cout, Cin, 3, 3), dtype=jnp.float32) * w_std
    fan_in = Cin * 3 * 3
    bound = 1.0 / math.sqrt(fan_in)
    bias = jax.random.uniform(kb, (Cout,), dtype=jnp.float32, minval=-bound, maxval=bound)
    gamma = jnp.ones((Cout,), dtype=jnp.float32)   # init_layer: BN gamma = 1
    beta = jnp.zeros((Cout,), dtype=jnp.float32)   # init_layer: BN beta  = 0

    ref = jax.block_until_ready(reference_forward(x, weight, bias, gamma, beta))

    # Auto tile sizing (one halo'd row tile per image at this size).
    out = jax.block_until_ready(conv_block_forward(x, weight, bias, gamma, beta))
    assert out.shape == (N, Cout, H // 2, W // 2), out.shape
    err = float(jnp.max(jnp.abs(out - ref)))
    assert err < 3e-2, err   # bf16 matmul inputs / f32 accumulation vs f32 reference

    # Multi-tile path (2 row tiles per image) exercises the dynamic halo'd row window.
    out2 = jax.block_until_ready(
        conv_block_forward(x, weight, bias, gamma, beta, pool_rows_per_tile=4))
    err2 = float(jnp.max(jnp.abs(out2 - ref)))
    assert err2 < 3e-2, err2

    print("KERNEL_OK")
</pallas_src>

<mosaic_0001>
module attributes {stable_mosaic.version = 11 : i64} {
  func.func @_stats_kernel(%arg0: i32, %arg1: i32, %arg2: memref<1x18x18x4xbf16, #tpu.memory_space<vmem>>, %arg3: memref<3x12x128xbf16, #tpu.memory_space<vmem>>, %arg4: memref<1x1x2x128xf32, #tpu.memory_space<vmem>>) attributes {dimension_semantics = [#tpu.dimension_semantics<parallel>, #tpu.dimension_semantics<parallel>], iteration_bounds = array<i64: 2, 1>, scalar_prefetch = 0 : i64, scratch_operands = 0 : i64, tpu.core_type = #tpu.core_type<tc>, window_params = [{transform_indices = @transform_0, window_bounds = array<i64: 1, 18, 18, 4>}, {pipeline_mode = #tpu.pipeline_mode<synchronous>, transform_indices = @transform_1, window_bounds = array<i64: 3, 12, 128>}, {transform_indices = @transform_2, window_bounds = array<i64: 1, 1, 2, 128>}]} {
    %c16_i32 = arith.constant 16 : i32
    %0 = arith.muli %arg1, %c16_i32 : i32
    %c0_i32 = arith.constant 0 : i32
    %1 = arith.addi %0, %c0_i32 : i32
    %c0 = arith.constant 0 : index
    %2 = arith.index_cast %1 : i32 to index
    %c0_0 = arith.constant 0 : index
    %c0_1 = arith.constant 0 : index
    %3 = vector.load %arg2[%c0, %2, %c0_0, %c0_1] : memref<1x18x18x4xbf16, #tpu.memory_space<vmem>>, vector<1x16x18x4xbf16>
    %4 = vector.shape_cast %3 : vector<1x16x18x4xbf16> to vector<16x18x4xbf16>
    %5 = vector.extract_strided_slice %4 {offsets = [0, 0, 0], sizes = [16, 16, 4], strides = [1, 1, 1]} : vector<16x18x4xbf16> to vector<16x16x4xbf16>
    %6 = vector.extract_strided_slice %4 {offsets = [0, 1, 0], sizes = [16, 16, 4], strides = [1, 1, 1]} : vector<16x18x4xbf16> to vector<16x16x4xbf16>
    %7 = vector.extract_strided_slice %4 {offsets = [0, 2, 0], sizes = [16, 16, 4], strides = [1, 1, 1]} : vector<16x18x4xbf16> to vector<16x16x4xbf16>
    %8 = tpu.concatenate %5, %6, %7 in 2 : vector<16x16x4xbf16>, vector<16x16x4xbf16>, vector<16x16x4xbf16> -> vector<16x16x12xbf16>
    %9 = vector.shape_cast %8 : vector<16x16x12xbf16> to vector<256x12xbf16>
    %c0_2 = arith.constant 0 : index
    %c0_3 = arith.constant 0 : index
    %c0_4 = arith.constant 0 : index
    %10 = vector.load %arg3[%c0_2, %c0_3, %c0_4] : memref<3x12x128xbf16, #tpu.memory_space<vmem>>, vector<1x12x128xbf16>
    %11 = vector.shape_cast %10 : vector<1x12x128xbf16> to vector<12x128xbf16>
    %cst = arith.constant dense<0.000000e+00> : vector<256x128xf32>
    %12 = tpu.matmul %9, %11, %cst {dimension_numbers = #tpu.dot_dimension_numbers<[1], [0], [0], [1], [0, 0, 1, 1], [], []>} : vector<256x12xbf16>, vector<12x128xbf16>, vector<256x128xf32> -> vector<256x128xf32>
    %c1_i32 = arith.constant 1 : i32
    %13 = arith.addi %0, %c1_i32 : i32
    %c0_5 = arith.constant 0 : index
    %14 = arith.index_cast %13 : i32 to index
    %c0_6 = arith.constant 0 : index
    %c0_7 = arith.constant 0 : index
    %15 = vector.load %arg2[%c0_5, %14, %c0_6, %c0_7] : memref<1x18x18x4xbf16, #tpu.memory_space<vmem>>, vector<1x16x18x4xbf16>
    %16 = vector.shape_cast %15 : vector<1x16x18x4xbf16> to vector<16x18x4xbf16>
    %17 = vector.extract_strided_slice %16 {offsets = [0, 0, 0], sizes = [16, 16, 4], strides = [1, 1, 1]} : vector<16x18x4xbf16> to vector<16x16x4xbf16>
    %18 = vector.extract_strided_slice %16 {offsets = [0, 1, 0], sizes = [16, 16, 4], strides = [1, 1, 1]} : vector<16x18x4xbf16> to vector<16x16x4xbf16>
    %19 = vector.extract_strided_slice %16 {offsets = [0, 2, 0], sizes = [16, 16, 4], strides = [1, 1, 1]} : vector<16x18x4xbf16> to vector<16x16x4xbf16>
    %20 = tpu.concatenate %17, %18, %19 in 2 : vector<16x16x4xbf16>, vector<16x16x4xbf16>, vector<16x16x4xbf16> -> vector<16x16x12xbf16>
    %21 = vector.shape_cast %20 : vector<16x16x12xbf16> to vector<256x12xbf16>
    %c1 = arith.constant 1 : index
    %c0_8 = arith.constant 0 : index
    %c0_9 = arith.constant 0 : index
    %22 = vector.load %arg3[%c1, %c0_8, %c0_9] : memref<3x12x128xbf16, #tpu.memory_space<vmem>>, vector<1x12x128xbf16>
    %23 = vector.shape_cast %22 : vector<1x12x128xbf16> to vector<12x128xbf16>
    %cst_10 = arith.constant dense<0.000000e+00> : vector<256x128xf32>
    %24 = tpu.matmul %21, %23, %cst_10 {dimension_numbers = #tpu.dot_dimension_numbers<[1], [0], [0], [1], [0, 0, 1, 1], [], []>} : vector<256x12xbf16>, vector<12x128xbf16>, vector<256x128xf32> -> vector<256x128xf32>
    %25 = arith.addf %12, %24 : vector<256x128xf32>
    %c2_i32 = arith.constant 2 : i32
    %26 = arith.addi %0, %c2_i32 : i32
    %c0_11 = arith.constant 0 : index
    %27 = arith.index_cast %26 : i32 to index
    %c0_12 = arith.constant 0 : index
    %c0_13 = arith.constant 0 : index
    %28 = vector.load %arg2[%c0_11, %27, %c0_12, %c0_13] : memref<1x18x18x4xbf16, #tpu.memory_space<vmem>>, vector<1x16x18x4xbf16>
    %29 = vector.shape_cast %28 : vector<1x16x18x4xbf16> to vector<16x18x4xbf16>
    %30 = vector.extract_strided_slice %29 {offsets = [0, 0, 0], sizes = [16, 16, 4], strides = [1, 1, 1]} : vector<16x18x4xbf16> to vector<16x16x4xbf16>
    %31 = vector.extract_strided_slice %29 {offsets = [0, 1, 0], sizes = [16, 16, 4], strides = [1, 1, 1]} : vector<16x18x4xbf16> to vector<16x16x4xbf16>
    %32 = vector.extract_strided_slice %29 {offsets = [0, 2, 0], sizes = [16, 16, 4], strides = [1, 1, 1]} : vector<16x18x4xbf16> to vector<16x16x4xbf16>
    %33 = tpu.concatenate %30, %31, %32 in 2 : vector<16x16x4xbf16>, vector<16x16x4xbf16>, vector<16x16x4xbf16> -> vector<16x16x12xbf16>
    %34 = vector.shape_cast %33 : vector<16x16x12xbf16> to vector<256x12xbf16>
    %c2 = arith.constant 2 : index
    %c0_14 = arith.constant 0 : index
    %c0_15 = arith.constant 0 : index
    %35 = vector.load %arg3[%c2, %c0_14, %c0_15] : memref<3x12x128xbf16, #tpu.memory_space<vmem>>, vector<1x12x128xbf16>
    %36 = vector.shape_cast %35 : vector<1x12x128xbf16> to vector<12x128xbf16>
    %cst_16 = arith.constant dense<0.000000e+00> : vector<256x128xf32>
    %37 = tpu.matmul %34, %36, %cst_16 {dimension_numbers = #tpu.dot_dimension_numbers<[1], [0], [0], [1], [0, 0, 1, 1], [], []>} : vector<256x12xbf16>, vector<12x128xbf16>, vector<256x128xf32> -> vector<256x128xf32>
    %38 = arith.addf %25, %37 : vector<256x128xf32>
    %cst_17 = arith.constant dense<0.000000e+00> : vector<128xf32>
    %39 = vector.multi_reduction <add>, %38, %cst_17 [0] : vector<256x128xf32> to vector<128xf32>
    %40 = vector.shape_cast %39 : vector<128xf32> to vector<1x128xf32>
    %41 = arith.mulf %38, %38 : vector<256x128xf32>
    %cst_18 = arith.constant dense<0.000000e+00> : vector<128xf32>
    %42 = vector.multi_reduction <add>, %41, %cst_18 [0] : vector<256x128xf32> to vector<128xf32>
    %43 = vector.shape_cast %42 : vector<128xf32> to vector<1x128xf32>
    %44 = tpu.concatenate %40, %43 in 0 : vector<1x128xf32>, vector<1x128xf32> -> vector<2x128xf32>
    %c0_19 = arith.constant 0 : index
    %c0_20 = arith.constant 0 : index
    %c0_21 = arith.constant 0 : index
    %c0_22 = arith.constant 0 : index
    %45 = vector.load %arg4[%c0_19, %c0_20, %c0_21, %c0_22] : memref<1x1x2x128xf32, #tpu.memory_space<vmem>>, vector<1x1x2x128xf32>
    %46 = vector.shape_cast %45 : vector<1x1x2x128xf32> to vector<2x128xf32>
    %47 = vector.shape_cast %44 : vector<2x128xf32> to vector<1x1x2x128xf32>
    tpu.vector_store %arg4[%c0_19, %c0_20, %c0_21, %c0_22], %47 {strides = array<i32>} : memref<1x1x2x128xf32, #tpu.memory_space<vmem>>, vector<1x1x2x128xf32>,
    return
  }
  func.func @transform_0(%arg0: i32, %arg1: i32) -> (i32, i32, i32, i32) {
    %c0_i32 = arith.constant 0 : i32
    %c0_i32_0 = arith.constant 0 : i32
    %c0_i32_1 = arith.constant 0 : i32
    %c0_i32_2 = arith.constant 0 : i32
    return %arg0, %c0_i32, %c0_i32_0, %c0_i32_1 : i32, i32, i32, i32
  }
  func.func @transform_1(%arg0: i32, %arg1: i32) -> (i32, i32, i32) {
    %c0_i32 = arith.constant 0 : i32
    %c0_i32_0 = arith.constant 0 : i32
    %c0_i32_1 = arith.constant 0 : i32
    %c0_i32_2 = arith.constant 0 : i32
    return %c0_i32, %c0_i32_0, %c0_i32_1 : i32, i32, i32
  }
  func.func @transform_2(%arg0: i32, %arg1: i32) -> (i32, i32, i32, i32) {
    %c0_i32 = arith.constant 0 : i32
    %c0_i32_0 = arith.constant 0 : i32
    %c0_i32_1 = arith.constant 0 : i32
    return %arg0, %arg1, %c0_i32, %c0_i32_0 : i32, i32, i32, i32
  }
}

</mosaic_0001>

<bundles_post_ra>
// kernel: tpu_custom_call.1
= control target key start
LH: loop header
LB: loop body
LE: loop exit
PB: predicated region body
PF: predicated region fallthrough
CT: control target
= control target key end

     0   :  { %7 = vsyncpa [#allocation3], 0  ;;  %s4379_s0 = inlined_call_operand.vmem [shape: bf16[2,18,18,4], index: 0, kind: input, shape index: {}]   ;;  %s4380_s1 = inlined_call_operand.vmem [shape: bf16[3,12,128], index: 1, kind: input, shape index: {}]   ;;  %s4381_s2 = inlined_call_operand.hbm [shape: f32[2,1,2,128], index: 2, kind: output, shape index: {}]  }
   0x1   :  { %9 = vsyncpa [#allocation3 + $0x1], 0  ;;  %s3416_s9 = smov 0   ;;  %s3418_s10 = smov 0  }
   0x2   :  { %s3420_s11 = smov 0   ;;  %s3422_s12 = smov 0  }
   0x3   :  { %s3424_s13 = smov 0   ;;  %s3426_s14 = smov 0  }
   0x4 LB: > { %s2652_s15 = sadd.s32 4294967295, %s3396_s14   ;;  %s2653_s16 = sadd.s32 4294967294, %s3396_s14   ;;  %s3396_s14 = sphi %s3426_s14, %s15_s14   ;;  %s3392_s13 = sphi %s3424_s13, %s4388_s13   ;;  %s3388_s12 = sphi %s3422_s12, %s4387_s12   ;;  %s3384_s11 = sphi %s3420_s11, %s4386_s11   ;;  %s3380_s10 = sphi %s3418_s10, %s4385_s10   ;;  %s3376_s9 = sphi %s3416_s9, %s4384_s9  }
   0x5   : > { %s27_s17 = sadd.s32 1, %s3392_s13  ;;  %s83_s18 = sadd.s32 1, %s3384_s11 }
   0x6   : > { %p29_p0 = scmp.ge.s32.totalorder %s27_s17, 2  ;;  %p93_p1 = scmp.ne.s32.totalorder %s3384_s11, %s3380_s10 }
   0x7   : > { %p94_p2 = scmp.eq.s32.totalorder %s2652_s15, 1  ;;  %p99_p3 = scmp.ne.s32.totalorder %s3380_s10, %s3376_s9 }
   0x8   : > { %s4390_s17 = smov (%p29_p0, %s27_s17), 0  ;;  %p100_p5 = scmp.eq.s32.totalorder %s2653_s16, 1 }
   0x9   : > { %p3456_p4 = por %p94_p2, %p93_p1  ;;  %s78_s20 = ssub.s32 %s3392_s13, %s4390_s17 }
   0xa   : > { %p2656_p6 = scmp.ge.s32.totalorder %s3396_s14, 1  ;;  %p81_p7 = scmp.eq.s32.totalorder %s78_s20, 0 }
   0xb   : > { %p3463_p8 = por %p100_p5, %p99_p3  ;;  %p129_p9 = scmp.lt.s32.totalorder %s3396_s14, 3 }
   0xc   : > { %s3469_s22 = scalar_select %p81_p7, %s3384_s11, %s83_s18  }
   0xd   : > { %p130_p10 = pnand %p2656_p6, %p129_p9 }
   0xe   : > { %p151_p11 = scmp.lt.s32.totalorder (!%p130_p10), %s3388_s12, 1  ;;  %vm562_vm0 = vcmask (!%p130_p10), 1046528   ;;  %vm337_vm1 = vsmask.f32 (!%p130_p10), 7424  ;;  %s3398_s28 = smov (!%p130_p10), 8   ;;  %vm1300_vm2 = vcmask (!%p130_p10), 1045504  }
   0xf   : > { %133 = sbr.rel (%p130_p10) target bundleno = 589 (0x24d), region = 28  ;;  %s3399_s29 = smov (!%p130_p10), 4   ;;  %vm643_vm3 = vcmask (!%p130_p10), 31744   ;;  %vm676_vm4 = vcmask (!%p130_p10), 64512   ;;  %vm1267_vm5 = vcmask (!%p130_p10), 97280   ;;  %vm2556_vm6 = vcmask (!%p130_p10), 1040384  }
  0x10   : > { %s148_s8 = sand.u32 (!%p130_p10), 1, %s3380_s10   ;;  %s2907_s16 = sshll.u32 (!%p130_p10), %s3388_s12, 5 }
  0x11   : > { %s2657_s15 = sshll.u32 (!%p130_p10), %s148_s8, 1  ;;  %s4332_s25 = scalar_lea.hbm (!%p130_p10), %s4381_s2, %s2907_s16 }
  0x12   : > { %s150_s18 = scalar_lea.vmem (!%p130_p10), [#allocation2], %s2657_s15  ;;  %s2560_s26 = scalar_lea.sflag (!%p130_p10), [#allocation3], %s148_s8 }
  0x13   : > { %s2574_s20 = sshll.u32 (!%p130_p10), %s150_s18, 4  ;;  %s4334_s20 = int_to_ptr.vmem [resolvable:$true] %s2574_s20 }
  0x16   : > { %s152_s23 = scalar_select %p151_p11, %s3388_s12, 1 }
  0x17   : > { %s3400_s12 = smov [#allocation2]  }
  0x18   : > { %s3133_s24 = smul.u32 216, %s152_s23 }
  0x1a   : > { %s3476_s27 = scalar_lea.vmem %s4379_s0, %s3133_s24 }
  0x1b   : > { %v3191_v0 = vld [vmem:[%s3476_s27 + $0xc] sm:$0xff]   ;;  %v3192_v1 = vld [vmem:[%s3476_s27 + $0x14] ss:$0 sps:$4 sm:$0x11]   ;;  %v3193_v2 = vld [vmem:[%s3476_s27] sm:$0xff]  }
  0x1c   : > { %v566_v3 = vrot.slane %v3191_v0, 1  ;;  %v567_v4 = vrot.slane %v3192_v1, 1  ;;  %v3194_v5 = vld [vmem:[%s3476_s27 + $0x8] ss:$0 sps:$4 sm:$0x11]   ;;  %v3195_v6 = vld [vmem:[%s3476_s27 + $0xc] sm:$0xff]  }
  0x1d   : > { %v563_v7 = vrot.slane %v3193_v2, 1  ;;  %v339_v8 = vshrl.u32 %v3193_v2, 16  ;;  %v564_v10 = vrot.slane %v3194_v5, 1  ;;  %v3196_v11 = vld [vmem:[%s3476_s27 + $0x14] ss:$0 sps:$4 sm:$0x11]  }
  0x1e   : > { %v568_v9 = vsel %vm562_vm0, %v566_v3, %v567_v4  ;;  %v1115_v12 = vrot.slane %v3195_v6, 1  ;;  %v341_v13 = vshll.u32 %v3193_v2, 16  ;;  %v346_v14 = vshll.u32 %v3194_v5, 16  ;;  %v3197_v15 = vld [vmem:[%s3476_s27 + $0x18] sm:$0xff]   ;;  %v3492_v31 = vld [vmem:[%s3476_s27 + $0x24] sm:$0xff]   ;;  %v3514_v60 = vld [vmem:[%s3476_s27 + $0x30] sm:$0xff]  }
  0x1f   : > { %613 = vrot.lane.b32.xlu0 %v568_v9, %s3398_s28  ;;  %v565_v16 = vsel %vm562_vm0, %v563_v7, %v564_v10  ;;  %v1116_v17 = vrot.slane %v3196_v11, 1  ;;  %v892_v18 = vshrl.u32 %v3195_v6, 16  ;;  %v3198_v21 = vld [vmem:[%s3476_s27 + $0x20] ss:$0 sps:$4 sm:$0x11]   ;;  %v1118_v22 = vrot.slane %v3197_v15, 1 }
  0x20   : > { %611 = vrot.lane.b32.xlu1 %v565_v16, %s3398_s28  ;;  %v343_v19 = vrot.slane %v341_v13, 1  ;;  %v348_v20 = vrot.slane %v346_v14, 1  ;;  %v894_v24 = vshll.u32 %v3195_v6, 16  ;;  %v899_v25 = vshll.u32 %v3196_v11, 16  ;;  %v3201_v41 = vld [vmem:[%s3476_s27 + $0x18] sm:$0xff]   ;;  %v3508_v53 = vld [vmem:[%s3476_s27 + $0x24] sm:$0xff]  }
  0x21   : > { %v1117_v23 = vsel %vm562_vm0, %v1115_v12, %v1116_v17  ;;  %v351_v26 = vshrl.u32 %v3191_v0, 16  ;;  %v1119_v28 = vrot.slane %v3198_v21, 1  ;;  %v353_v29 = vshll.u32 %v3191_v0, 16  ;;  %v3498_v40 = vld [vmem:[%s3476_s27 + $0x2c] ss:$0 sps:$4 sm:$0x11]  }
  0x22   : > { %v344_v27 = vor.u32 %v343_v19, %v339_v8  ;;  %v358_v30 = vshll.u32 %v3192_v1, 16  ;;  %v896_v32 = vrot.slane %v894_v24, 1  ;;  %v901_v33 = vrot.slane %v899_v25, 1  ;;  %v3202_v52 = vld [vmem:[%s3476_s27 + $0x20] ss:$0 sps:$4 sm:$0x11]  }
  0x23   : > { %v904_v34 = vshrl.u32 %v3197_v15, 16  ;;  %v906_v35 = vshll.u32 %v3197_v15, 16  ;;  %v1120_v37 = vsel %vm562_vm0, %v1118_v22, %v1119_v28  ;;  %v355_v38 = vrot.slane %v353_v29, 1  ;;  %v3518_v0 = vld [vmem:[%s3476_s27 + $0x2c] ss:$0 sps:$4 sm:$0x11]  }
  0x24   : > { %1163 = vrot.lane.b32.xlu1 %v1117_v23, %s3398_s28  ;;  %v349_v36 = vsel %vm337_vm1, %v344_v27, %v348_v20  ;;  %v360_v39 = vrot.slane %v358_v30, 1  ;;  %v897_v42 = vor.u32 %v896_v32, %v892_v18  ;;  %v911_v44 = vshll.u32 %v3198_v21, 16  ;;  %v3206_v10 = vld [vmem:[%s3476_s27 + $0x38] ss:$0 sps:$4 sm:$0x11]   ;;  %v3531_v15 = vld [vmem:[%s3476_s27 + $0x3c] sm:$0xff]  }
  0x25   : > { %530 = vrot.lane.b32.xlu0 %v349_v36, %s3399_s29  ;;  %v908_v43 = vrot.slane %v906_v35, 1  ;;  %v916_v45 = vshrl.u32 %v3492_v31, 16  ;;  %v356_v46 = vor.u32 %v355_v38, %v351_v26  ;;  %v918_v47 = vshll.u32 %v3492_v31, 16  ;;  %v3534_v18 = vld [vmem:[%s3476_s27 + $0x30] sm:$0xff]   ;;  %v3542_v22 = vld [vmem:[%s3476_s27 + $0x3c] sm:$0xff]  }
  0x26   : > { %v923_v48 = vshll.u32 %v3498_v40, 16  ;;  %v902_v49 = vsel %vm337_vm1, %v897_v42, %v901_v33  ;;  %v913_v51 = vrot.slane %v911_v44, 1  ;;  %v363_v55 = vshrl.u32 %v3201_v41, 16  ;;  %v3539_v21 = vld [vmem:[%s3476_s27 + $0x44] ss:$0 sps:$4 sm:$0x11]  }
  0x27   : > { %v909_v50 = vor.u32 %v908_v43, %v904_v34  ;;  %v920_v54 = vrot.slane %v918_v47, 1  ;;  %v365_v56 = vshll.u32 %v3201_v41, 16  ;;  %v361_v57 = vsel %vm337_vm1, %v356_v46, %v360_v39  ;;  %v3210_v32 = vld [vmem:[%s3476_s27 + $0x38] ss:$0 sps:$4 sm:$0x11]  }
  0x28   : > { %1165 = vrot.lane.b32.xlu1 %v1120_v37, %s3398_s28  ;;  %v925_v58 = vrot.slane %v923_v48, 1  ;;  %v370_v59 = vshll.u32 %v3202_v52, 16  ;;  %v375_v2 = vshrl.u32 %v3508_v53, 16  ;;  %v377_v3 = vshll.u32 %v3508_v53, 16 }
  0x29   : > { %1083 = vrot.lane.b32.xlu0 %v902_v49, %s3399_s29  ;;  %v914_v61 = vsel %vm337_vm1, %v909_v50, %v913_v51  ;;  %v921_v62 = vor.u32 %v920_v54, %v916_v45  ;;  %v367_v63 = vrot.slane %v365_v56, 1  ;;  %v382_v5 = vshll.u32 %v3518_v0, 16  ;;  %v3566_v45 = vld [vmem:[%s3476_s27 + $0x48] sm:$0xff]  }
  0x2a   : > { %v372_v1 = vrot.slane %v370_v59, 1  ;;  %v569_v7 = vrot.slane %v3201_v41, 1  ;;  %v570_v8 = vrot.slane %v3202_v52, 1  ;;  %v379_v9 = vrot.slane %v377_v3, 1  ;;  %v3586_v3 = vld [vmem:[%s3476_s27 + $0x48] sm:$0xff]  }
  0x2b   : > { %v368_v4 = vor.u32 %v367_v63, %v363_v55  ;;  %v926_v6 = vsel %vm337_vm1, %v921_v62, %v925_v58  ;;  %v384_v12 = vrot.slane %v382_v5, 1  ;;  %v928_v13 = vshrl.u32 %v3514_v60, 16  ;;  %v3579_v58 = vld [vmem:[%s3476_s27 + $0x54] sm:$0xff]  }
  0x2c   : > { %532 = vrot.lane.b32.xlu1 %v361_v57, %s3399_s29  ;;  %v930_v14 = vshll.u32 %v3514_v60, 16  ;;  %v380_v16 = vor.u32 %v379_v9, %v375_v2  ;;  %v935_v17 = vshll.u32 %v3206_v10, 16  ;;  %v1121_v19 = vrot.slane %v3492_v31, 1 }
  0x2d   : > { %1085 = vrot.lane.b32.xlu0 %v914_v61, %s3399_s29  ;;  %v373_v11 = vsel %vm337_vm1, %v368_v4, %v372_v1  ;;  %v571_v23 = vsel %vm562_vm0, %v569_v7, %v570_v8  ;;  %v1122_v24 = vrot.slane %v3498_v40, 1  ;;  %v1124_v25 = vrot.slane %v3514_v60, 1  ;;  %v3559_v40 = vld [vmem:[%s3476_s27 + $0x44] ss:$0 sps:$4 sm:$0x11]   ;;  %v3596_v8 = vld [vmem:[%s3476_s27 + $0x54] sm:$0xff]  }
  0x2e   : > { %v932_v20 = vrot.slane %v930_v14, 1  ;;  %v385_v26 = vsel %vm337_vm1, %v380_v16, %v384_v12  ;;  %v937_v28 = vrot.slane %v935_v17, 1  ;;  %v942_v29 = vshll.u32 %v3531_v15, 16  ;;  %v3593_v7 = vld [vmem:[%s3476_s27 + $0x5c] ss:$0 sps:$4 sm:$0x11]  }
  0x2f   : > { %v1125_v30 = vrot.slane %v3206_v10, 1  ;;  %v940_v31 = vshrl.u32 %v3531_v15, 16  ;;  %v389_v33 = vshll.u32 %v3534_v18, 16  ;;  %v947_v34 = vshll.u32 %v3539_v21, 16 }
  0x30   : > { %1087 = vrot.lane.b32.xlu1 %v926_v6, %s3399_s29  ;;  %v933_v27 = vor.u32 %v932_v20, %v928_v13  ;;  %v387_v35 = vshrl.u32 %v3534_v18, 16  ;;  %v1123_v36 = vsel %vm562_vm0, %v1121_v19, %v1122_v24  ;;  %v944_v37 = vrot.slane %v942_v29, 1  ;;  %v3221_v29 = vld [vmem:[%s3476_s27 + $0x60] sm:$0xff]  }
  0x31   : > { %534 = vrot.lane.b32.xlu0 %v373_v11, %s3399_s29  ;;  %v391_v38 = vrot.slane %v389_v33, 1  ;;  %v394_v39 = vshll.u32 %v3210_v32, 16  ;;  %v572_v42 = vrot.slane %v3508_v53, 1  ;;  %v573_v43 = vrot.slane %v3518_v0, 1 }
  0x32   : > { %v938_v41 = vsel %vm337_vm1, %v933_v27, %v937_v28  ;;  %v401_v44 = vshll.u32 %v3542_v22, 16  ;;  %v949_v46 = vrot.slane %v947_v34, 1  ;;  %v399_v48 = vshrl.u32 %v3542_v22, 16  ;;  %v3214_v53 = vld [vmem:[%s3476_s27 + $0x50] ss:$0 sps:$4 sm:$0x11]  }
  0x33   : > { %v396_v47 = vrot.slane %v394_v39, 1  ;;  %v1126_v49 = vsel %vm562_vm0, %v1124_v25, %v1125_v30  ;;  %v945_v50 = vor.u32 %v944_v37, %v940_v31  ;;  %v392_v51 = vor.u32 %v391_v38, %v387_v35  ;;  %v3218_v11 = vld [vmem:[%s3476_s27 + $0x50] ss:$0 sps:$4 sm:$0x11]  }
  0x34   : > { %615 = vrot.lane.b32.xlu1 %v571_v23, %s3398_s28  ;;  %v406_v52 = vshll.u32 %v3559_v40, 16  ;;  %v574_v54 = vsel %vm562_vm0, %v572_v42, %v573_v43  ;;  %v403_v55 = vrot.slane %v401_v44, 1  ;;  %v954_v56 = vshll.u32 %v3566_v45, 16  ;;  %v3628_v44 = vld [vmem:[%s3476_s27 + $0x18] sm:$0xff]  }
  0x35   : > { %536 = vrot.lane.b32.xlu0 %v385_v26, %s3399_s29  ;;  %v575_v57 = vrot.slane %v3534_v18, 1  ;;  %v950_v59 = vsel %vm337_vm1, %v945_v50, %v949_v46  ;;  %v397_v60 = vsel %vm337_vm1, %v392_v51, %v396_v47  ;;  %v576_v61 = vrot.slane %v3210_v32, 1  ;;  %v3634_v51 = vld [vmem:[%s3476_s27 + $0x6c] sm:$0xff]  }
  0x36   : > { %v952_v62 = vshrl.u32 %v3566_v45, 16  ;;  %v404_v63 = vor.u32 %v403_v55, %v399_v48  ;;  %v408_v0 = vrot.slane %v406_v52, 1  ;;  %v956_v1 = vrot.slane %v954_v56, 1  ;;  %v3640_v56 = vld [vmem:[%s3476_s27 + $0x20] ss:$0 sps:$4 sm:$0x11]  }
  0x37   : > { %v959_v2 = vshll.u32 %v3214_v53, 16  ;;  %v1127_v4 = vrot.slane %v3531_v15, 1  ;;  %v1128_v5 = vrot.slane %v3539_v21, 1  ;;  %v1130_v6 = vrot.slane %v3566_v45, 1 }
  0x38   : > { %1167 = vrot.lane.b32.xlu1 %v1123_v36, %s3398_s28  ;;  %v577_v9 = vsel %vm562_vm0, %v575_v57, %v576_v61  ;;  %v966_v10 = vshll.u32 %v3579_v58, 16  ;;  %v409_v12 = vsel %vm337_vm1, %v404_v63, %v408_v0  ;;  %v957_v13 = vor.u32 %v956_v1, %v952_v62  ;;  %v3610_v21 = vld [vmem:[%s3476_s27 + $0x5c] ss:$0 sps:$4 sm:$0x11]  }
  0x39   : > { %1089 = vrot.lane.b32.xlu0 %v938_v41, %s3399_s29  ;;  %v961_v14 = vrot.slane %v959_v2, 1  ;;  %v413_v15 = vshll.u32 %v3586_v3, 16  ;;  %v1131_v16 = vrot.slane %v3214_v53, 1  ;;  %v578_v17 = vrot.slane %v3542_v22, 1  ;;  %v3650_v1 = vld [vmem:[%s3476_s27 + $0x78] sm:$0xff]  }
  0x3a   : > { %v579_v18 = vrot.slane %v3559_v40, 1  ;;  %v964_v19 = vshrl.u32 %v3579_v58, 16  ;;  %v971_v20 = vshll.u32 %v3593_v7, 16  ;;  %v1129_v23 = vsel %vm562_vm0, %v1127_v4, %v1128_v5  ;;  %v3222_v36 = vld [vmem:[%s3476_s27 + $0x68] ss:$0 sps:$4 sm:$0x11]  }
  0x3b   : > { %v968_v24 = vrot.slane %v966_v10, 1  ;;  %v411_v25 = vshrl.u32 %v3586_v3, 16  ;;  %v962_v22 = vsel %vm337_vm1, %v957_v13, %v961_v14  ;;  %v415_v26 = vrot.slane %v413_v15, 1  ;;  %v3226_v61 = vld [vmem:[%s3476_s27 + $0x74] ss:$0 sps:$4 sm:$0x11]  }
  0x3c   : > { %1169 = vrot.lane.b32.xlu1 %v1126_v49, %s3398_s28  ;;  %v418_v27 = vshll.u32 %v3218_v11, 16  ;;  %v425_v28 = vshll.u32 %v3596_v8, 16  ;;  %v973_v30 = vrot.slane %v971_v20, 1  ;;  %v423_v31 = vshrl.u32 %v3596_v8, 16 }
  0x3d   : > { %617 = vrot.lane.b32.xlu0 %v574_v54, %s3398_s28  ;;  %v1132_v32 = vsel %vm562_vm0, %v1130_v6, %v1131_v16  ;;  %v580_v33 = vsel %vm562_vm0, %v578_v17, %v579_v18  ;;  %v969_v34 = vor.u32 %v968_v24, %v964_v19  ;;  %v430_v35 = vshll.u32 %v3610_v21, 16  ;;  %v3663_v10 = vld [vmem:[%s3476_s27 + $0x80] ss:$0 sps:$4 sm:$0x11]  }
  0x3e   : > { %v416_v37 = vor.u32 %v415_v26, %v411_v25  ;;  %v420_v38 = vrot.slane %v418_v27, 1  ;;  %v427_v39 = vrot.slane %v425_v28, 1  ;;  %v978_v40 = vshll.u32 %v3221_v29, 16  ;;  %v3230_v24 = vld [vmem:[%s3476_s27 + $0x2c] ss:$0 sps:$4 sm:$0x11]  }
  0x3f   : > { %v581_v41 = vrot.slane %v3586_v3, 1  ;;  %v582_v42 = vrot.slane %v3218_v11, 1  ;;  %v976_v43 = vshrl.u32 %v3221_v29, 16  ;;  %v974_v45 = vsel %vm337_vm1, %v969_v34, %v973_v30  ;;  %v3681_v30 = vld [vmem:[%s3476_s27 + $0x30] sm:$0xff]  }
  0x40   : > { %1091 = vrot.lane.b32.xlu1 %v950_v59, %s3399_s29  ;;  %v432_v46 = vrot.slane %v430_v35, 1  ;;  %v983_v47 = vshll.u32 %v3222_v36, 16  ;;  %v421_v48 = vsel %vm337_vm1, %v416_v37, %v420_v38  ;;  %v428_v49 = vor.u32 %v427_v39, %v423_v31  ;;  %v3684_v31 = vld [vmem:[%s3476_s27 + $0x84] sm:$0xff]   ;;  %v3689_v37 = vld [vmem:[%s3476_s27 + $0x38] ss:$0 sps:$4 sm:$0x11]  }
  0x41   : > { %538 = vrot.lane.b32.xlu0 %v397_v60, %s3399_s29  ;;  %v980_v50 = vrot.slane %v978_v40, 1  ;;  %v1133_v52 = vrot.slane %v3579_v58, 1  ;;  %v1134_v53 = vrot.slane %v3593_v7, 1  ;;  %v1136_v54 = vrot.slane %v3221_v29, 1  ;;  %v3658_v7 = vld [vmem:[%s3476_s27 + $0x24] sm:$0xff]  }
  0x42   : > { %v1137_v55 = vrot.slane %v3222_v36, 1  ;;  %v1849_v57 = vshll.u32 %v3628_v44, 16  ;;  %v583_v59 = vsel %vm562_vm0, %v581_v41, %v582_v42  ;;  %v584_v60 = vrot.slane %v3596_v8, 1  ;;  %v3234_v39 = vld [vmem:[%s3476_s27 + $0x8c] ss:$0 sps:$4 sm:$0x11]  }
  0x43   : > { %v433_v58 = vsel %vm337_vm1, %v428_v49, %v432_v46  ;;  %v981_v62 = vor.u32 %v980_v50, %v976_v43  ;;  %v985_v63 = vrot.slane %v983_v47, 1  ;;  %v990_v0 = vshll.u32 %v3634_v51, 16  ;;  %v3700_v46 = vld [vmem:[%s3476_s27 + $0x90] sm:$0xff]  }
  0x44   : > { %619 = vrot.lane.b32.xlu1 %v577_v9, %s3398_s28  ;;  %v585_v2 = vrot.slane %v3610_v21, 1  ;;  %v1847_v3 = vshrl.u32 %v3628_v44, 16  ;;  %v1851_v4 = vrot.slane %v1849_v57, 1  ;;  %v1854_v5 = vshll.u32 %v3640_v56, 16 }
  0x45   : > { %540 = vrot.lane.b32.xlu0 %v409_v12, %s3399_s29  ;;  %v988_v6 = vshrl.u32 %v3634_v51, 16  ;;  %v1135_v8 = vsel %vm562_vm0, %v1133_v52, %v1134_v53  ;;  %v995_v9 = vshll.u32 %v3226_v61, 16  ;;  %v986_v11 = vsel %vm337_vm1, %v981_v62, %v985_v63 }
  0x46   : > { %v992_v12 = vrot.slane %v990_v0, 1  ;;  %v1002_v13 = vshll.u32 %v3650_v1, 16  ;;  %v1138_v14 = vsel %vm562_vm0, %v1136_v54, %v1137_v55  ;;  %v586_v15 = vsel %vm562_vm0, %v584_v60, %v585_v2 }
  0x47   : > { %v1852_v16 = vor.u32 %v1851_v4, %v1847_v3  ;;  %v1856_v17 = vrot.slane %v1854_v5, 1  ;;  %v1000_v18 = vshrl.u32 %v3650_v1, 16  ;;  %v1007_v19 = vshll.u32 %v3663_v10, 16  ;;  %v3725_v5 = vld [vmem:[%s3476_s27 + $0x44] ss:$0 sps:$4 sm:$0x11]  }
  0x48   : > { %1171 = vrot.lane.b32.xlu1 %v1129_v23, %s3398_s28  ;;  %v993_v20 = vor.u32 %v992_v12, %v988_v6  ;;  %v997_v21 = vrot.slane %v995_v9, 1  ;;  %v1004_v23 = vrot.slane %v1002_v13, 1  ;;  %v1861_v25 = vshll.u32 %v3658_v7, 16  ;;  %v3730_v9 = vld [vmem:[%s3476_s27 + $0x48] sm:$0xff]  }
  0x49   : > { %1093 = vrot.lane.b32.xlu0 %v962_v22, %s3399_s29  ;;  %v1139_v22 = vrot.slane %v3634_v51, 1  ;;  %v1857_v26 = vsel %vm337_vm1, %v1852_v16, %v1856_v17  ;;  %v1140_v27 = vrot.slane %v3226_v61, 1  ;;  %v1009_v28 = vrot.slane %v1007_v19, 1 }
  0x4a   : > { %v1859_v29 = vshrl.u32 %v3658_v7, 16  ;;  %v1863_v34 = vrot.slane %v1861_v25, 1  ;;  %v1866_v35 = vshll.u32 %v3230_v24, 16  ;;  %v2070_v36 = vrot.slane %v3628_v44, 1 }
  0x4b   : > { %v2071_v38 = vrot.slane %v3640_v56, 1  ;;  %v1141_v40 = vsel %vm562_vm0, %v1139_v22, %v1140_v27  ;;  %v1873_v41 = vshll.u32 %v3681_v30, 16  ;;  %v1014_v42 = vshll.u32 %v3684_v31, 16  ;;  %v3710_v56 = vld [vmem:[%s3476_s27 + $0x98] ss:$0 sps:$4 sm:$0x11]  }
  0x4c   : > { %1173 = vrot.lane.b32.xlu1 %v1132_v32, %s3398_s28  ;;  %v998_v32 = vsel %vm337_vm1, %v993_v20, %v997_v21  ;;  %v1868_v44 = vrot.slane %v1866_v35, 1  ;;  %v2073_v47 = vrot.slane %v3658_v7, 1  ;;  %v1871_v49 = vshrl.u32 %v3681_v30, 16  ;;  %v3743_v20 = vld [vmem:[%s3476_s27 + $0x50] ss:$0 sps:$4 sm:$0x11]  }
  0x4d   : > { %621 = vrot.lane.b32.xlu0 %v580_v33, %s3398_s28  ;;  %v1005_v33 = vor.u32 %v1004_v23, %v1000_v18  ;;  %v1878_v50 = vshll.u32 %v3689_v37, 16  ;;  %v1019_v51 = vshll.u32 %v3234_v39, 16  ;;  %v2072_v52 = vsel %vm562_vm0, %v2070_v36, %v2071_v38  ;;  %v3255_v35 = vld [vmem:[%s4380_s1 + $0x8] sm:$0x3f]   ;;  %v3256_v36 = vld [vmem:[%s4380_s1] sm:$0x3f]  }
  0x4e   : > { %v1875_v53 = vrot.slane %v1873_v41, 1  ;;  %v1012_v54 = vshrl.u32 %v3684_v31, 16  ;;  %v1016_v55 = vrot.slane %v1014_v42, 1  ;;  %v1143_v60 = vrot.slane %v3663_v10, 1  ;;  %3129 = vmatprep.subr.msk.bf16.mxu1 %vm1300_vm2, %v3255_v35  ;;  %3130 = vmatprep.subr.msk.bf16.mxu0 %vm1300_vm2, %v3256_v36 }
  0x4f   : > { %v1010_v43 = vsel %vm337_vm1, %v1005_v33, %v1009_v28  ;;  %v1026_v61 = vshll.u32 %v3700_v46, 16  ;;  %v1880_v62 = vrot.slane %v1878_v50, 1  ;;  %v1021_v63 = vrot.slane %v1019_v51, 1 }
  0x50   : > { %1095 = vrot.lane.b32.xlu1 %v974_v45, %s3399_s29  ;;  %v1864_v45 = vor.u32 %v1863_v34, %v1859_v29  ;;  %v1024_v0 = vshrl.u32 %v3700_v46, 16  ;;  %v1876_v3 = vor.u32 %v1875_v53, %v1871_v49  ;;  %v1031_v4 = vshll.u32 %v3710_v56, 16  ;;  %v3759_v34 = vld [vmem:[%s3476_s27 + $0xa8] sm:$0xff]  }
  0x51   : > { %542 = vrot.lane.b32.xlu0 %v421_v48, %s3399_s29  ;;  %v2074_v48 = vrot.slane %v3230_v24, 1  ;;  %v1028_v7 = vrot.slane %v1026_v61, 1  ;;  %v1145_v10 = vrot.slane %v3684_v31, 1  ;;  %v1890_v19 = vshll.u32 %v3725_v5, 16 }
  0x52   : > { %v1869_v57 = vsel %vm337_vm1, %v1864_v45, %v1868_v44  ;;  %v1881_v12 = vsel %vm337_vm1, %v1876_v3, %v1880_v62  ;;  %v1897_v21 = vshll.u32 %v3730_v9, 16  ;;  %v2076_v23 = vrot.slane %v3681_v30, 1  ;;  %v3242_v31 = vld [vmem:[%s3476_s27 + $0xa4] ss:$0 sps:$4 sm:$0x11]  }
  0x53   : > { %v2075_v2 = vsel %vm562_vm0, %v2073_v47, %v2074_v48  ;;  %v1029_v16 = vor.u32 %v1028_v7, %v1024_v0  ;;  %v2077_v24 = vrot.slane %v3689_v37, 1  ;;  %v1148_v25 = vrot.slane %v3700_v46, 1  ;;  %v3774_v45 = vld [vmem:[%s3476_s27 + $0xb0] ss:$0 sps:$4 sm:$0x11]   ;;  %v3780_v47 = vld [vmem:[%s3476_s27 + $0x54] sm:$0xff]  }
  0x54   : > { %623 = vrot.lane.b32.xlu1 %v583_v59, %s3398_s28  ;;  %v1142_v59 = vrot.slane %v3650_v1, 1  ;;  %v1017_v1 = vor.u32 %v1016_v55, %v1012_v54  ;;  %v2080_v28 = vrot.slane %v3725_v5, 1  ;;  %v1149_v29 = vrot.slane %v3710_v56, 1  ;;  %v3246_v56 = vld [vmem:[%s3476_s27 + $0x5c] ss:$0 sps:$4 sm:$0x11]  }
  0x55   : > { %544 = vrot.lane.b32.xlu0 %v433_v58, %s3399_s29  ;;  %v3717_v58 = vld [vmem:[%s3476_s27 + $0x3c] sm:$0xff]   ;;  %v1892_v33 = vrot.slane %v1890_v19, 1  ;;  %v1895_v37 = vshrl.u32 %v3730_v9, 16  ;;  %v1899_v38 = vrot.slane %v1897_v21, 1  ;;  %v2078_v42 = vsel %vm562_vm0, %v2076_v23, %v2077_v24  ;;  %v3807_v7 = vld [vmem:[%s3476_s27 + $0xb4] sm:$0xff]  }
  0x56   : > { %v1144_v6 = vsel %vm562_vm0, %v1142_v59, %v1143_v60  ;;  %v1022_v13 = vsel %vm337_vm1, %v1017_v1, %v1021_v63  ;;  %v1883_v17 = vshrl.u32 %v3717_v58, 16  ;;  %v2079_v27 = vrot.slane %v3717_v58, 1  ;;  %v3804_v3 = vld [vmem:[%s3476_s27 + $0x60] sm:$0xff]  }
  0x57   : > { %v1050_v46 = vshll.u32 %v3759_v34, 16  ;;  %v1302_v48 = vsel %vm1300_vm2, %v3255_v35, 0  ;;  %v3785_v49 = vsel %vm1300_vm2, %v3256_v36, 0  ;;  %v1150_v50 = vsel %vm562_vm0, %v1148_v25, %v1149_v29  ;;  %v3832_v25 = vld [vmem:[%s3476_s27 + $0xc8] ss:$0 sps:$4 sm:$0x11]  }
  0x58   : > { %1175 = vrot.lane.b32.xlu1 %v1135_v8, %s3398_s28  ;;  %v1885_v8 = vshll.u32 %v3717_v58, 16  ;;  %2962 = vmatpush3.bf16.msra.mxu1 %v1302_v48  ;;  %v1900_v53 = vor.u32 %v1899_v38, %v1895_v37  ;;  %v1055_v60 = vshll.u32 %v3774_v45, 16  ;;  %v1909_v61 = vshll.u32 %v3780_v47, 16  ;;  %v3839_v29 = vld [vmem:[%s3476_s27 + $0x6c] sm:$0xff]  }
  0x59   : > { %1097 = vrot.lane.b32.xlu0 %v986_v11, %s3399_s29  ;;  %v3735_v11 = vld [vmem:[%s3476_s27 + $0x9c] sm:$0xff]   ;;  %2996 = vmatpush3.bf16.msra.mxu0 %v3785_v49  ;;  %v1052_v59 = vrot.slane %v1050_v46, 1  ;;  %v1152_v0 = vrot.slane %v3242_v31, 1  ;;  %v2085_v19 = vrot.slane %v3780_v47, 1  ;;  %v2086_v21 = vrot.slane %v3246_v56, 1 }
  0x5a   : > { %v1887_v18 = vrot.slane %v1885_v8, 1  ;;  %v1038_v22 = vshll.u32 %v3735_v11, 16  ;;  %3131 = vmatprep.subr.msk.bf16.mxu1 %vm1300_vm2, %v3256_v36  ;;  %v1151_v58 = vrot.slane %v3735_v11, 1  ;;  %v1911_v5 = vrot.slane %v1909_v61, 1 }
  0x5b   : > { %v2082_v8 = vrot.slane %v3730_v9, 1  ;;  %v1154_v23 = vrot.slane %v3759_v34, 1  ;;  %v1155_v24 = vrot.slane %v3774_v45, 1  ;;  %v1079_v36 = vshll.u32 %v3832_v25, 16 }
  0x5c   : > { %1177 = vrot.lane.b32.xlu1 %v1138_v14, %s3398_s28  ;;  %v1146_v14 = vrot.slane %v3234_v39, 1  ;;  %v1888_v30 = vor.u32 %v1887_v18, %v1883_v17  ;;  %v1902_v39 = vshll.u32 %v3743_v20, 16  ;;  %v1040_v41 = vrot.slane %v1038_v22, 1  ;;  %v3824_v18 = vld [vmem:[%s3476_s27 + $0xc0] sm:$0xff]  }
  0x5d   : > { %625 = vrot.lane.b32.xlu0 %v586_v15, %s3398_s28  ;;  %v1033_v15 = vrot.slane %v1031_v4, 1  ;;  %v1057_v4 = vrot.slane %v1055_v60, 1  ;;  %v1062_v17 = vshll.u32 %v3807_v7, 16  ;;  %v3254_v45 = vld [vmem:[%s3476_s27 + $0x74] ss:$0 sps:$4 sm:$0x11]  }
  0x5e   : > { %v1893_v44 = vsel %vm337_vm1, %v1888_v30, %v1892_v33  ;;  %v1904_v51 = vrot.slane %v1902_v39, 1  ;;  %v1074_v33 = vshll.u32 %v3824_v18, 16  ;;  %v1072_v39 = vshrl.u32 %v3824_v18, 16 }
  0x5f   : > { %v1064_v30 = vrot.slane %v1062_v17, 1  ;;  %v1931_v48 = vshrl.u32 %v3839_v29, 16  ;;  %v2088_v60 = vrot.slane %v3804_v3, 1 }
  0x60   : > { %2038 = vrot.lane.b32.xlu1 %v1857_v26, %s3399_s29  ;;  %v1147_v26 = vsel %vm562_vm0, %v1145_v10, %v1146_v14  ;;  %v1905_v62 = vsel %vm337_vm1, %v1900_v53, %v1904_v51  ;;  %v3812_v10 = vld [vmem:[%s3476_s27 + $0x68] ss:$0 sps:$4 sm:$0x11]   ;;  %v1921_v14 = vshll.u32 %v3804_v3, 16  ;;  %v3862_v53 = vld [vmem:[%s3476_s27 + $0x60] sm:$0xff]  }
  0x61   : > { %1099 = vrot.lane.b32.xlu0 %v998_v32, %s3399_s29  ;;  %v1034_v32 = vsel %vm337_vm1, %v1029_v16, %v1033_v15 }
  0x64   : > { %1179 = vrot.lane.b32.xlu1 %v1141_v40, %s3398_s28  ;;  %v1036_v40 = vshrl.u32 %v3735_v11, 16  ;;  %v3815_v11 = vld [vmem:[%s3476_s27 + $0xbc] ss:$0 sps:$4 sm:$0x11]  }
  0x65   : > { %1101 = vrot.lane.b32.xlu0 %v1010_v43, %s3399_s29  ;;  %v1043_v43 = vshll.u32 %v3242_v31, 16  ;;  %v1158_v46 = vrot.slane %v3815_v11, 1 }
  0x66   : > { %v1041_v54 = vor.u32 %v1040_v41, %v1036_v40  ;;  %v1933_v40 = vshll.u32 %v3839_v29, 16  ;;  %v1156_v41 = vsel %vm562_vm0, %v1154_v23, %v1155_v24 }
  0x67   : > { %v1045_v55 = vrot.slane %v1043_v43, 1  ;;  %v1076_v43 = vrot.slane %v1074_v33, 1 }
  0x68   : > { %2118 = vrot.lane.b32.xlu1 %v2072_v52, %s3398_s28  ;;  %v2081_v52 = vsel %vm562_vm0, %v2079_v27, %v2080_v28  ;;  %v1923_v27 = vrot.slane %v1921_v14, 1  ;;  %v1067_v28 = vshll.u32 %v3815_v11, 16  ;;  %v2092_v11 = vrot.slane %v3254_v45, 1 }
  0x69   : > { %2040 = vrot.lane.b32.xlu0 %v1869_v57, %s3399_s29  ;;  %v1048_v57 = vshrl.u32 %v3759_v34, 16  ;;  %v1046_v63 = vsel %vm337_vm1, %v1041_v54, %v1045_v55  ;;  %v2087_v34 = vsel %vm562_vm0, %v2085_v19, %v2086_v21  ;;  %v1077_v55 = vor.u32 %v1076_v43, %v1072_v39  ;;  %v3895_v21 = vld [vmem:[%s3476_s27 + $0x84] sm:$0xff]   ;;  %v3291_v43 = vld [vmem:[%s3476_s27 + $0xc] sm:$0xff]  }
  0x6a   : > { %v1069_v38 = vrot.slane %v1067_v28, 1 }
  0x6b   : > { %v1053_v1 = vor.u32 %v1052_v59, %v1048_v57  ;;  %v3866_v57 = vld [vmem:[%s3476_s27 + $0x80] ss:$0 sps:$4 sm:$0x11]   ;;  %v3869_v59 = vld [vmem:[%s3476_s27 + $0x68] ss:$0 sps:$4 sm:$0x11]  }
  0x6c   : > { %2120 = vrot.lane.b32.xlu1 %v2075_v2, %s3398_s28  ;;  %v1907_v2 = vshrl.u32 %v3780_v47, 16  ;;  %v1081_v47 = vrot.slane %v1079_v36, 1  ;;  %v1957_v36 = vshll.u32 %v3895_v21, 16 }
  0x6d   : > { %1181 = vrot.lane.b32.xlu0 %v1144_v6, %s3398_s28  ;;  %v1914_v6 = vshll.u32 %v3246_v56, 16  ;;  %v1058_v15 = vsel %vm337_vm1, %v1053_v1, %v1057_v4  ;;  %v1938_v56 = vshll.u32 %v3254_v45, 16 }
  0x6e   : > { %v1912_v16 = vor.u32 %v1911_v5, %v1907_v2  ;;  %v437_v2 = vshll.u32 %v3862_v53, 16  ;;  %v1082_v4 = vsel %vm337_vm1, %v1077_v55, %v1081_v47  ;;  %v588_v47 = vrot.slane %v3869_v59, 1  ;;  %v3927_v55 = vld [vmem:[%s3476_s27 + $0x90] sm:$0xff]  }
  0x6f   : > { %v1916_v9 = vrot.slane %v1914_v6, 1  ;;  %v1940_v6 = vrot.slane %v1938_v56, 1 }
  0x70   : > { %2042 = vrot.lane.b32.xlu1 %v1881_v12, %s3399_s29  ;;  %v1153_v12 = vsel %vm562_vm0, %v1151_v58, %v1152_v0  ;;  %v2091_v0 = vrot.slane %v3839_v29, 1  ;;  %v439_v19 = vrot.slane %v437_v2, 1 }
  0x71   : > { %1103 = vrot.lane.b32.xlu0 %v1022_v13, %s3399_s29  ;;  %v2083_v13 = vrot.slane %v3743_v20, 1  ;;  %v1926_v20 = vshll.u32 %v3812_v10, 16  ;;  %v1917_v31 = vsel %vm337_vm1, %v1912_v16, %v1916_v9  ;;  %v435_v16 = vshrl.u32 %v3862_v53, 16 }
  0x72   : > { %v442_v9 = vshll.u32 %v3869_v59, 16  ;;  %v2093_v33 = vsel %vm562_vm0, %v2091_v0, %v2092_v11 }
  0x73   : > { %v2084_v22 = vsel %vm562_vm0, %v2082_v8, %v2083_v13  ;;  %v1928_v35 = vrot.slane %v1926_v20, 1  ;;  %v3883_v8 = vld [vmem:[%s3476_s27 + $0x6c] sm:$0xff]   ;;  %v1161_v13 = vrot.slane %v3832_v25, 1  ;;  %v3899_v20 = vld [vmem:[%s3476_s27 + $0x74] ss:$0 sps:$4 sm:$0x11]  }
  0x74   : > { %1183 = vrot.lane.b32.xlu1 %v1147_v26, %s3398_s28  ;;  %v1919_v26 = vshrl.u32 %v3804_v3, 16  ;;  %v449_v25 = vshll.u32 %v3883_v8, 16  ;;  %v447_v39 = vshrl.u32 %v3883_v8, 16 }
  0x75   : > { %1105 = vrot.lane.b32.xlu0 %v1034_v32, %s3399_s29  ;;  %v1060_v32 = vshrl.u32 %v3807_v7, 16 }
  0x76   : > { %v1924_v37 = vor.u32 %v1923_v27, %v1919_v26  ;;  %v3290_v26 = vld [vmem:[%s3476_s27] sm:$0xff]  }
  0x78   : > { %2122 = vrot.lane.b32.xlu1 %v2078_v42, %s3398_s28  ;;  %v1065_v42 = vor.u32 %v1064_v30, %v1060_v32  ;;  %v1929_v51 = vsel %vm337_vm1, %v1924_v37, %v1928_v35  ;;  %v444_v32 = vrot.slane %v442_v9, 1  ;;  %v3910_v35 = vld [vmem:[%s3476_s27 + $0x8c] ss:$0 sps:$4 sm:$0x11]   ;;  %v3955_v9 = vld [vmem:[%s3476_s27 + $0x84] sm:$0xff]  }
  0x79   : > { %2044 = vrot.lane.b32.xlu0 %v1893_v44, %s3399_s29  ;;  %v1157_v44 = vrot.slane %v3807_v7, 1 }
  0x7a   : > { %v1070_v54 = vsel %vm337_vm1, %v1065_v42, %v1069_v38  ;;  %v440_v38 = vor.u32 %v439_v19, %v435_v16  ;;  %v1969_v16 = vshll.u32 %v3927_v55, 16  ;;  %v3960_v19 = vld [vmem:[%s3476_s27 + $0x80] ss:$0 sps:$4 sm:$0x11]  }
  0x7c   : > { %2124 = vrot.lane.b32.xlu1 %v2081_v52, %s3398_s28  ;;  %v1935_v52 = vrot.slane %v1933_v40, 1  ;;  %v451_v40 = vrot.slane %v449_v25, 1 }
  0x7d   : > { %1185 = vrot.lane.b32.xlu0 %v1150_v50, %s3398_s28  ;;  %v3857_v50 = vld [vmem:[%s3476_s27 + $0x78] sm:$0xff]  }
  0x7e   : > { %v1945_v61 = vshll.u32 %v3857_v50, 16  ;;  %v1936_v5 = vor.u32 %v1935_v52, %v1931_v48  ;;  %v1959_v52 = vrot.slane %v1957_v36, 1  ;;  %v3294_v36 = vld [vmem:[%s3476_s27 + $0x18] sm:$0xff]  }
  0x80   : > { %2046 = vrot.lane.b32.xlu1 %v1905_v62, %s3399_s29  ;;  %v1159_v62 = vsel %vm562_vm0, %v1157_v44, %v1158_v46  ;;  %v1947_v14 = vrot.slane %v1945_v61, 1  ;;  %v1941_v24 = vsel %vm337_vm1, %v1936_v5, %v1940_v6  ;;  %v587_v46 = vrot.slane %v3862_v53, 1  ;;  %v3293_v5 = vld [vmem:[%s3476_s27 + $0x18] sm:$0xff]  }
  0x81   : > { %1107 = vrot.lane.b32.xlu0 %v1046_v63, %s3399_s29  ;;  %v2089_v63 = vrot.slane %v3812_v10, 1  ;;  %v1943_v10 = vshrl.u32 %v3857_v50, 16  ;;  %v452_v61 = vor.u32 %v451_v40, %v447_v39  ;;  %v466_v40 = vshll.u32 %v3960_v19, 16 }
  0x83   : > { %v2090_v17 = vsel %vm562_vm0, %v2088_v60, %v2089_v63  ;;  %v1948_v28 = vor.u32 %v1947_v14, %v1943_v10  ;;  %v445_v60 = vsel %vm337_vm1, %v440_v38, %v444_v32  ;;  %v3292_v63 = vld [vmem:[%s3476_s27 + $0xc] sm:$0xff]  }
  0x84   : > { %1187 = vrot.lane.b32.xlu1 %v1153_v12, %s3398_s28  ;;  %v1160_v12 = vrot.slane %v3824_v18, 1  ;;  %v3289_v10 = vld [vmem:[%s4380_s1 + $0x10] sm:$0x3f]  }
  0x85   : > { %1109 = vrot.lane.b32.xlu0 %v1058_v15, %s3399_s29  ;;  %v1950_v15 = vshll.u32 %v3866_v57, 16  ;;  %3132 = vmatprep.subr.msk.bf16.mxu0 %vm1300_vm2, %v3289_v10 }
  0x88   : > { %2126 = vrot.lane.b32.xlu1 %v2084_v22, %s3398_s28 }
  0x89   : > { %2048 = vrot.lane.b32.xlu0 %v1917_v31, %s3399_s29  ;;  %v1952_v31 = vrot.slane %v1950_v15, 1 }
  0x8b   : > { %v1953_v44 = vsel %vm337_vm1, %v1948_v28, %v1952_v31  ;;  %v591_v28 = vrot.slane %v3899_v20, 1  ;;  %v1967_v31 = vshrl.u32 %v3927_v55, 16 }
  0x8c   : > { %2128 = vrot.lane.b32.xlu1 %v2087_v34, %s3398_s28  ;;  %v1162_v34 = vsel %vm562_vm0, %v1160_v12, %v1161_v13  ;;  %v589_v12 = vsel %vm562_vm0, %v587_v46, %v588_v47  ;;  %v3945_v13 = vld [vmem:[%s3476_s27 + $0x98] ss:$0 sps:$4 sm:$0x11]  }
  0x8d   : > { %1189 = vrot.lane.b32.xlu0 %v1156_v41, %s3398_s28  ;;  %v454_v41 = vshll.u32 %v3899_v20, 16  ;;  %v1974_v32 = vshll.u32 %v3945_v13, 16 }
  0x8f   : > { %v456_v59 = vrot.slane %v454_v41, 1  ;;  %v3985_v41 = vld [vmem:[%s3476_s27 + $0x9c] sm:$0xff]   ;;  %v1976_v46 = vrot.slane %v1974_v32, 1 }
  0x90   : > { %2050 = vrot.lane.b32.xlu1 %v1929_v51, %s3399_s29  ;;  %v1955_v51 = vshrl.u32 %v3895_v21, 16 }
  0x91   : > { %1111 = vrot.lane.b32.xlu0 %v1070_v54, %s3399_s29  ;;  %v3875_v58 = vpop.permute.xlu0 %613  ;;  %v1962_v54 = vshll.u32 %v3910_v35, 16 }
  0x92   : > { %v612_v1 = vpop.permute.xlu1 %611  ;;  %v1960_v14 = vor.u32 %v1959_v52, %v1955_v51 }
  0x93   : > { %v1964_v15 = vrot.slane %v1962_v54, 1  ;;  %v3295_v54 = vld [vmem:[%s3476_s27 + $0x24] sm:$0xff]  }
  0x94   : > { %1191 = vrot.lane.b32.xlu1 %v1159_v62, %s3398_s28  ;;  %v3932_v62 = vld [vmem:[%s3476_s27 + $0x78] sm:$0xff]  }
  0x95   : > { %1113 = vrot.lane.b32.xlu0 %v1082_v4, %s3399_s29  ;;  %v2095_v4 = vrot.slane %v3866_v57, 1  ;;  %v459_v20 = vshrl.u32 %v3932_v62, 16 }
  0x96   : > { %v1164_v23 = vpop.permute.xlu1 %1163 }
  0x97   : > { %v531_v22 = vpop.permute.xlu0 %530 }
  0x98   : > { %v645_v27 = vsel %vm643_vm3, %v3290_v26, %v531_v22  ;;  %2130 = vrot.lane.b32.xlu1 %v2090_v17, %s3398_s28  ;;  %v457_v17 = vsel %vm337_vm1, %v452_v61, %v456_v59  ;;  %v2097_v22 = vrot.slane %v3895_v21, 1  ;;  %v2098_v26 = vrot.slane %v3910_v35, 1 }
  0x99   : > { %2052 = vrot.lane.b32.xlu0 %v1941_v24, %s3399_s29  ;;  %v678_v30 = vsel %vm676_vm4, %v645_v27, %v612_v1  ;;  %v2094_v1 = vrot.slane %v3857_v50, 1  ;;  %v590_v27 = vrot.slane %v3883_v8, 1  ;;  %v2255_v35 = vsel %vm1300_vm2, %v3289_v10, 0 }
  0x9a   : > { %2997 = vmatprep.mubr.msk.bf16.mxu0 %vm1267_vm5, %v678_v30  ;;  %v1166_v37 = vpop.permute.xlu1 %1165  ;;  %v1965_v30 = vsel %vm337_vm1, %v1960_v14, %v1964_v15  ;;  %v468_v59 = vrot.slane %v466_v40, 1  ;;  %v4013_v14 = vld [vmem:[%s3476_s27 + $0x90] sm:$0xff]  }
  0x9b   : > { %v1084_v42 = vpop.permute.xlu0 %1083  ;;  %v2096_v25 = vsel %vm562_vm0, %v2094_v1, %v2095_v4  ;;  %v593_v4 = vrot.slane %v3932_v62, 1  ;;  %v3296_v15 = vld [vmem:[%s3476_s27 + $0x30] sm:$0xff]  }
  0x9c   : > { %v1196_v45 = vsel %vm643_vm3, %v3291_v43, %v1084_v42  ;;  %2132 = vrot.lane.b32.xlu1 %v2093_v33, %s3398_s28  ;;  %v1971_v33 = vrot.slane %v1969_v16, 1 }
  0x9d   : > { %1193 = vrot.lane.b32.xlu0 %v1162_v34, %s3398_s28  ;;  %v1228_v48 = vsel %vm676_vm4, %v1196_v45, %v1164_v23  ;;  %v461_v23 = vshll.u32 %v3932_v62, 16  ;;  %v3976_v34 = vld [vmem:[%s3476_s27 + $0x8c] ss:$0 sps:$4 sm:$0x11]   ;;  %v2099_v45 = vsel %vm562_vm0, %v2097_v22, %v2098_v26 }
  0x9e   : > { %2963 = vmatprep.mubr.msk.bf16.mxu1 %vm1267_vm5, %v1228_v48  ;;  %v533_v56 = vpop.permute.xlu1 %532  ;;  %v1972_v47 = vor.u32 %v1971_v33, %v1967_v31  ;;  %v471_v48 = vshrl.u32 %v3955_v9, 16  ;;  %v478_v52 = vshll.u32 %v3976_v34, 16  ;;  %v4027_v31 = vld [vmem:[%s3476_s27 + $0xb0] ss:$0 sps:$4 sm:$0x11]   ;;  %v2101_v33 = vrot.slane %v3945_v13, 1 }
  0x9f   : > { %v647_v0 = vsel %vm643_vm3, %v3292_v63, %v533_v56  ;;  %v1086_v2 = vpop.permute.xlu0 %1085  ;;  %v463_v39 = vrot.slane %v461_v23, 1  ;;  %v3998_v63 = vld [vmem:[%s3476_s27 + $0xa4] ss:$0 sps:$4 sm:$0x11]  }
  0xa0   : > { %v1198_v6 = vsel %vm643_vm3, %v3293_v5, %v1086_v2  ;;  %2054 = vrot.lane.b32.xlu1 %v1953_v44, %s3399_s29  ;;  %v680_v11 = vsel %vm676_vm4, %v647_v0, %v3875_v58  ;;  %v592_v44 = vsel %vm562_vm0, %v590_v27, %v591_v28  ;;  %v1981_v0 = vshll.u32 %v3985_v41, 16 }
  0xa1   : > { %546 = vrot.lane.b32.xlu0 %v445_v60, %s3399_s29  ;;  %v1230_v57 = vsel %vm676_vm4, %v1198_v6, %v1166_v37  ;;  %2998 = vmatmul.mubr.msk.bf16.vlgmr.msra.gmra.mrb[0].mxu0 %vm1267_vm5, %v680_v11  ;;  %v464_v61 = vor.u32 %v463_v39, %v459_v20  ;;  %v594_v5 = vrot.slane %v3960_v19, 1  ;;  %v4007_v6 = vld [vmem:[%s3476_s27 + $0xa8] sm:$0xff]   ;;  %v1977_v11 = vsel %vm337_vm1, %v1972_v47, %v1976_v46 }
  0xa2   : > { %2964 = vmatmul.mubr.msk.bf16.vlgmr.msra.gmra.mrb[0].mxu1 %vm1267_vm5, %v1230_v57  ;;  %v1088_v58 = vpop.permute.xlu1 %1087  ;;  %3030 = vmatpush3.bf16.msra.mxu0 %v2255_v35  ;;  %v480_v10 = vrot.slane %v478_v52, 1  ;;  %v1979_v57 = vshrl.u32 %v3985_v41, 16  ;;  %v1983_v19 = vrot.slane %v1981_v0, 1  ;;  %v1986_v23 = vshll.u32 %v3998_v63, 16 }
  0xa3   : > { %v535_v24 = vpop.permute.xlu0 %534  ;;  %3064 = vmatpush3.bf16.msra.mxu1 %v3785_v49  ;;  %v473_v49 = vshll.u32 %v3955_v9, 16  ;;  %v1200_v56 = vsel %vm643_vm3, %v3295_v54, %v1088_v58  ;;  %v2100_v28 = vrot.slane %v3927_v55, 1  ;;  %v1993_v32 = vshll.u32 %v4007_v6, 16  ;;  %v4052_v52 = vld [vmem:[%s3476_s27 + $0xa4] ss:$0 sps:$4 sm:$0x11]  }
  0xa4   : > { %627 = vrot.lane.b32.xlu1 %v589_v12, %s3398_s28  ;;  %v649_v37 = vsel %vm643_vm3, %v3294_v36, %v535_v24  ;;  %v3297_v24 = vld [vmem:[%s3476_s27 + $0x24] sm:$0xff]   ;;  %v485_v35 = vshll.u32 %v4013_v14, 16  ;;  %v4039_v36 = vld [vmem:[%s3476_s27 + $0x9c] sm:$0xff]   ;;  %v1984_v20 = vor.u32 %v1983_v19, %v1979_v57  ;;  %v1988_v39 = vrot.slane %v1986_v23, 1 }
  0xa5   : > { %548 = vrot.lane.b32.xlu0 %v457_v17, %s3399_s29  ;;  %v475_v51 = vrot.slane %v473_v49, 1  ;;  %v469_v17 = vsel %vm337_vm1, %v464_v61, %v468_v59  ;;  %v4035_v49 = vld [vmem:[%s3476_s27 + $0x98] ss:$0 sps:$4 sm:$0x11]   ;;  %v1991_v13 = vshrl.u32 %v4007_v6, 16  ;;  %v483_v46 = vshrl.u32 %v4013_v14, 16 }
  0xa6   : > { %v616_v38 = vpop.permute.xlu1 %615  ;;  %v2102_v47 = vsel %vm562_vm0, %v2100_v28, %v2101_v33  ;;  %v497_v54 = vshll.u32 %v4039_v36, 16  ;;  %v1989_v59 = vsel %vm337_vm1, %v1984_v20, %v1988_v39  ;;  %v597_v0 = vrot.slane %v3976_v34, 1  ;;  %v3300_v20 = vld [vmem:[%s3476_s27 + $0x48] sm:$0xff]  }
  0xa7   : > { %v682_v42 = vsel %vm676_vm4, %v649_v37, %v616_v38  ;;  %v537_v43 = vpop.permute.xlu0 %536  ;;  %v476_v12 = vor.u32 %v475_v51, %v471_v48  ;;  %v487_v48 = vrot.slane %v485_v35, 1  ;;  %v490_v51 = vshll.u32 %v4035_v49, 16 }
  0xa8   : > { %2134 = vrot.lane.b32.xlu1 %v2096_v25, %s3398_s28  ;;  %3001 = vmatprep.mubr.msk.bf16.mxu0 %vm1267_vm5, %v682_v42  ;;  %v651_v25 = vsel %vm643_vm3, %v3297_v24, %v537_v43  ;;  %v2103_v42 = vrot.slane %v3985_v41, 1  ;;  %v2104_v43 = vrot.slane %v3998_v63, 1  ;;  %v596_v63 = vrot.slane %v3955_v9, 1  ;;  %v4074_v24 = vld [vmem:[%s3476_s27 + $0xbc] ss:$0 sps:$4 sm:$0x11]  }
  0xa9   : > { %2056 = vrot.lane.b32.xlu0 %v1965_v30, %s3399_s29  ;;  %v595_v30 = vsel %vm562_vm0, %v593_v4, %v594_v5  ;;  %v481_v38 = vsel %vm337_vm1, %v476_v12, %v480_v10  ;;  %v495_v10 = vshrl.u32 %v4039_v36, 16  ;;  %v488_v57 = vor.u32 %v487_v48, %v483_v46 }
  0xaa   : > { %v1168_v60 = vpop.permute.xlu1 %1167  ;;  %v2105_v5 = vsel %vm562_vm0, %v2103_v42, %v2104_v43  ;;  %v492_v34 = vrot.slane %v490_v51, 1  ;;  %v598_v23 = vsel %vm562_vm0, %v596_v63, %v597_v0  ;;  %v600_v28 = vrot.slane %v4035_v49, 1  ;;  %v4103_v51 = vld [vmem:[%s3476_s27 + $0xc8] ss:$0 sps:$4 sm:$0x11]   ;;  %v4115_v63 = vld [vmem:[%s3476_s27 + $0xb4] sm:$0xff]  }
  0xab   : > { %v1232_v2 = vsel %vm676_vm4, %v1200_v56, %v1168_v60  ;;  %v1090_v1 = vpop.permute.xlu0 %1089  ;;  %v3298_v56 = vld [vmem:[%s3476_s27 + $0x30] sm:$0xff]   ;;  %v2010_v43 = vshll.u32 %v4074_v24, 16  ;;  %v2106_v48 = vrot.slane %v4007_v6, 1 }
  0xac   : > { %2136 = vrot.lane.b32.xlu1 %v2099_v45, %s3398_s28  ;;  %2967 = vmatprep.mubr.msk.bf16.mxu1 %vm1267_vm5, %v1232_v2  ;;  %v1202_v16 = vsel %vm643_vm3, %v3296_v15, %v1090_v1  ;;  %v1995_v45 = vrot.slane %v1993_v32, 1  ;;  %v4061_v2 = vld [vmem:[%s3476_s27 + $0xb4] sm:$0xff]   ;;  %v499_v15 = vrot.slane %v497_v54, 1  ;;  %v4083_v32 = vld [vmem:[%s3476_s27 + $0xc0] sm:$0xff]   ;;  %v493_v33 = vsel %vm337_vm1, %v488_v57, %v492_v34 }
  0xad   : > { %629 = vrot.lane.b32.xlu0 %v592_v44, %s3398_s28  ;;  %v1998_v44 = vshll.u32 %v4027_v31, 16  ;;  %v2003_v42 = vshrl.u32 %v4061_v2, 16  ;;  %v2017_v54 = vshll.u32 %v4083_v32, 16  ;;  %v2022_v34 = vshll.u32 %v4103_v51, 16 }
  0xae   : > { %v1170_v58 = vpop.permute.xlu1 %1169  ;;  %v500_v35 = vor.u32 %v499_v15, %v495_v10  ;;  %v2110_v10 = vrot.slane %v4074_v24, 1  ;;  %v3302_v24 = vld [vmem:[%s3476_s27 + $0x48] sm:$0xff]  }
  0xaf   : > { %v1234_v22 = vsel %vm676_vm4, %v1202_v16, %v1170_v58  ;;  %v618_v26 = vpop.permute.xlu0 %617  ;;  %v2000_v12 = vrot.slane %v1998_v44, 1  ;;  %v502_v16 = vshll.u32 %v4052_v52, 16  ;;  %v3299_v58 = vld [vmem:[%s3476_s27 + $0x3c] sm:$0xff]   ;;  %v2019_v57 = vrot.slane %v2017_v54, 1 }
  0xb0   : > { %v684_v27 = vsel %vm676_vm4, %v651_v25, %v618_v26  ;;  %2058 = vrot.lane.b32.xlu1 %v1977_v11, %s3399_s29  ;;  %2968 = vmatmul.mubr.msk.bf16.gmra.mrb[4].mxu1 %vm1267_vm5, %v1234_v22  ;;  %v1996_v11 = vor.u32 %v1995_v45, %v1991_v13  ;;  %v2005_v25 = vshll.u32 %v4061_v2, 16  ;;  %v3301_v13 = vld [vmem:[%s3476_s27 + $0x3c] sm:$0xff]  }
  0xb1   : > { %550 = vrot.lane.b32.xlu0 %v469_v17, %s3399_s29  ;;  %3002 = vmatmul.mubr.msk.bf16.gmra.mrb[4].mxu0 %vm1267_vm5, %v684_v27  ;;  %v599_v27 = vrot.slane %v4013_v14, 1 }
  0xb2   : > { %v1092_v37 = vpop.permute.xlu1 %1091  ;;  %v2007_v49 = vrot.slane %v2005_v25, 1 }
  0xb3   : > { %v539_v40 = vpop.permute.xlu0 %538  ;;  %v1204_v17 = vsel %vm643_vm3, %v3299_v58, %v1092_v37  ;;  %v504_v37 = vrot.slane %v502_v16, 1 }
  0xb4   : > { %631 = vrot.lane.b32.xlu1 %v595_v30, %s3398_s28  ;;  %v653_v60 = vsel %vm643_vm3, %v3298_v56, %v539_v40  ;;  %v2001_v30 = vsel %vm337_vm1, %v1996_v11, %v2000_v12  ;;  %v601_v56 = vsel %vm562_vm0, %v599_v27, %v600_v28  ;;  %v2109_v12 = vrot.slane %v4061_v2, 1 }
  0xb5   : > { %552 = vrot.lane.b32.xlu0 %v481_v38, %s3399_s29  ;;  %v4089_v38 = vld [vmem:[%s3476_s27 + $0xa8] sm:$0xff]   ;;  %v602_v27 = vrot.slane %v4039_v36, 1  ;;  %v603_v28 = vrot.slane %v4052_v52, 1 }
  0xb6   : > { %v620_v61 = vpop.permute.xlu1 %619  ;;  %v507_v15 = vshrl.u32 %v4089_v38, 16 }
  0xb7   : > { %v686_v1 = vsel %vm676_vm4, %v653_v60, %v620_v61  ;;  %v541_v4 = vpop.permute.xlu0 %540  ;;  %v2107_v60 = vrot.slane %v4027_v31, 1  ;;  %v4111_v61 = vld [vmem:[%s3476_s27 + $0xb0] ss:$0 sps:$4 sm:$0x11]   ;;  %v2015_v31 = vshrl.u32 %v4083_v32, 16 }
  0xb8   : > { %2138 = vrot.lane.b32.xlu1 %v2102_v47, %s3398_s28  ;;  %3005 = vmatprep.mubr.msk.bf16.mxu0 %vm1267_vm5, %v686_v1  ;;  %v655_v45 = vsel %vm643_vm3, %v3301_v13, %v541_v4  ;;  %v505_v1 = vsel %vm337_vm1, %v500_v35, %v504_v37  ;;  %v2008_v4 = vor.u32 %v2007_v49, %v2003_v42  ;;  %v3303_v13 = vld [vmem:[%s3476_s27 + $0x54] sm:$0xff]  }
  0xb9   : > { %2060 = vrot.lane.b32.xlu0 %v1989_v59, %s3399_s29  ;;  %v509_v59 = vshll.u32 %v4089_v38, 16  ;;  %v2108_v16 = vsel %vm562_vm0, %v2106_v48, %v2107_v60  ;;  %v2111_v37 = vsel %vm562_vm0, %v2109_v12, %v2110_v10 }
  0xba   : > { %v1172_v19 = vpop.permute.xlu1 %1171 }
  0xbb   : > { %v1236_v22 = vsel %vm676_vm4, %v1204_v17, %v1172_v19  ;;  %v1094_v26 = vpop.permute.xlu0 %1093  ;;  %v511_v58 = vrot.slane %v509_v59, 1  ;;  %v514_v17 = vshll.u32 %v4111_v61, 16  ;;  %v4128_v19 = vld [vmem:[%s3476_s27 + $0xbc] ss:$0 sps:$4 sm:$0x11]   ;;  %v605_v59 = vrot.slane %v4089_v38, 1 }
  0xbc   : > { %2140 = vrot.lane.b32.xlu1 %v2105_v5, %s3398_s28  ;;  %2971 = vmatprep.mubr.msk.bf16.mxu1 %vm1267_vm5, %v1236_v22  ;;  %v1206_v39 = vsel %vm643_vm3, %v3300_v20, %v1094_v26  ;;  %v2012_v5 = vrot.slane %v2010_v43, 1  ;;  %v2020_v20 = vor.u32 %v2019_v57, %v2015_v31  ;;  %v526_v43 = vshll.u32 %v4128_v19, 16 }
  0xbd   : > { %633 = vrot.lane.b32.xlu0 %v598_v23, %s3398_s28  ;;  %v521_v23 = vshll.u32 %v4115_v63, 16  ;;  %v512_v42 = vor.u32 %v511_v58, %v507_v15  ;;  %v516_v52 = vrot.slane %v514_v17, 1  ;;  %v3305_v15 = vld [vmem:[%s3476_s27 + $0x54] sm:$0xff]  }
  0xbe   : > { %v1174_v40 = vpop.permute.xlu1 %1173  ;;  %v2013_v26 = vsel %vm337_vm1, %v2008_v4, %v2012_v5  ;;  %v528_v5 = vrot.slane %v526_v43, 1 }
  0xbf   : > { %v1238_v44 = vsel %vm676_vm4, %v1206_v39, %v1174_v40  ;;  %v622_v46 = vpop.permute.xlu0 %621  ;;  %v2024_v39 = vrot.slane %v2022_v34, 1  ;;  %v519_v40 = vshrl.u32 %v4115_v63, 16  ;;  %v523_v49 = vrot.slane %v521_v23, 1 }
  0xc0   : > { %v688_v47 = vsel %vm676_vm4, %v655_v45, %v622_v46  ;;  %2062 = vrot.lane.b32.xlu1 %v2001_v30, %s3399_s29  ;;  %2972 = vmatmul.mubr.msk.bf16.gmra.mrb[8].mxu1 %vm1267_vm5, %v1238_v44  ;;  %v4137_v30 = vld [vmem:[%s3476_s27 + $0xcc] sm:$0xff]   ;;  %v604_v46 = vsel %vm562_vm0, %v602_v27, %v603_v28 }
  0xc1   : > { %554 = vrot.lane.b32.xlu0 %v493_v33, %s3399_s29  ;;  %3006 = vmatmul.mubr.msk.bf16.gmra.mrb[8].mxu0 %vm1267_vm5, %v688_v47  ;;  %v3288_v47 = vld [vmem:[%s3476_s27 + $0xd4] ss:$0 sps:$4 sm:$0x11]   ;;  %v2029_v48 = vshll.u32 %v4137_v30, 16  ;;  %v2025_v60 = vsel %vm337_vm1, %v2020_v20, %v2024_v39  ;;  %v524_v4 = vor.u32 %v523_v49, %v519_v40  ;;  %v2027_v31 = vshrl.u32 %v4137_v30, 16  ;;  %v3306_v39 = vld [vmem:[%s3476_s27 + $0x6c] sm:$0xff]  }
  0xc2   : > { %v1096_v0 = vpop.permute.xlu1 %1095  ;;  %v2034_v34 = vshll.u32 %v3288_v47, 16  ;;  %v2116_v20 = vrot.slane %v3288_v47, 1  ;;  %v609_v49 = vrot.slane %v4128_v19, 1 }
  0xc3   : > { %v543_v11 = vpop.permute.xlu0 %542  ;;  %v1208_v45 = vsel %vm643_vm3, %v3303_v13, %v1096_v0  ;;  %v517_v0 = vsel %vm337_vm1, %v512_v42, %v516_v52  ;;  %v2031_v57 = vrot.slane %v2029_v48, 1  ;;  %v608_v52 = vrot.slane %v4115_v63, 1 }
  0xc4   : > { %635 = vrot.lane.b32.xlu1 %v601_v56, %s3398_s28  ;;  %v657_v25 = vsel %vm643_vm3, %v3302_v24, %v543_v11  ;;  %v3304_v11 = vld [vmem:[%s3476_s27 + $0x60] sm:$0xff]   ;;  %v2112_v24 = vrot.slane %v4083_v32, 1  ;;  %v2036_v28 = vrot.slane %v2034_v34, 1 }
  0xc5   : > { %556 = vrot.lane.b32.xlu0 %v505_v1, %s3399_s29  ;;  %v606_v1 = vrot.slane %v4111_v61, 1  ;;  %v2032_v27 = vor.u32 %v2031_v57, %v2027_v31  ;;  %v610_v48 = vsel %vm562_vm0, %v608_v52, %v609_v49  ;;  %v3310_v31 = vld [vmem:[%s3476_s27 + $0x84] sm:$0xff]  }
  0xc6   : > { %v624_v22 = vpop.permute.xlu1 %623 }
  0xc7   : > { %v690_v33 = vsel %vm676_vm4, %v657_v25, %v624_v22  ;;  %v545_v35 = vpop.permute.xlu0 %544  ;;  %v607_v61 = vsel %vm562_vm0, %v605_v59, %v606_v1  ;;  %v2113_v25 = vrot.slane %v4103_v51, 1  ;;  %v2037_v42 = vsel %vm337_vm1, %v2032_v27, %v2036_v28  ;;  %v3313_v27 = vld [vmem:[%s3476_s27 + $0x90] sm:$0xff]  }
  0xc8   : > { %2142 = vrot.lane.b32.xlu1 %v2108_v16, %s3398_s28  ;;  %3009 = vmatprep.mubr.msk.bf16.mxu0 %vm1267_vm5, %v690_v33  ;;  %v659_v16 = vsel %vm643_vm3, %v3305_v15, %v545_v35 }
  0xc9   : > { %2064 = vrot.lane.b32.xlu0 %v2013_v26, %s3399_s29  ;;  %v529_v26 = vsel %vm337_vm1, %v524_v4, %v528_v5  ;;  %v2114_v35 = vsel %vm562_vm0, %v2112_v24, %v2113_v25  ;;  %v3312_v25 = vld [vmem:[%s3476_s27 + $0x3c] sm:$0xff]  }
  0xca   : > { %v1176_v44 = vpop.permute.xlu1 %1175 }
  0xcb   : > { %v1240_v54 = vsel %vm676_vm4, %v1208_v45, %v1176_v44  ;;  %v1098_v56 = vpop.permute.xlu0 %1097  ;;  %v3307_v44 = vld [vmem:[%s3476_s27 + $0x18] sm:$0xff]  }
  0xcc   : > { %2144 = vrot.lane.b32.xlu1 %v2111_v37, %s3398_s28  ;;  %2975 = vmatprep.mubr.msk.bf16.mxu1 %vm1267_vm5, %v1240_v54  ;;  %v1210_v12 = vsel %vm643_vm3, %v3304_v11, %v1098_v56  ;;  %v2115_v37 = vrot.slane %v4137_v30, 1  ;;  %v3308_v56 = vld [vmem:[%s3476_s27 + $0x24] sm:$0xff]  }
  0xcd   : > { %637 = vrot.lane.b32.xlu0 %v604_v46, %s3398_s28 }
  0xce   : > { %v1178_v10 = vpop.permute.xlu1 %1177  ;;  %v2117_v45 = vsel %vm562_vm0, %v2115_v37, %v2116_v20 }
  0xcf   : > { %v1242_v58 = vsel %vm676_vm4, %v1210_v12, %v1178_v10  ;;  %v626_v17 = vpop.permute.xlu0 %625 }
  0xd0   : > { %v692_v23 = vsel %vm676_vm4, %v659_v16, %v626_v17  ;;  %2066 = vrot.lane.b32.xlu1 %v2025_v60, %s3399_s29  ;;  %2976 = vmatmul.mubr.msk.bf16.gmra.mrb[12].mxu1 %vm1267_vm5, %v1242_v58  ;;  %v3311_v58 = vld [vmem:[%s3476_s27 + $0x30] sm:$0xff]  }
  0xd1   : > { %558 = vrot.lane.b32.xlu0 %v517_v0, %s3399_s29  ;;  %3010 = vmatmul.mubr.msk.bf16.gmra.mrb[12].mxu0 %vm1267_vm5, %v692_v23  ;;  %v3309_v0 = vld [vmem:[%s3476_s27 + $0x78] sm:$0xff]  }
  0xd2   : > { %v2039_v22 = vpop.permute.xlu1 %2038 }
  0xd3   : > { %v1100_v33 = vpop.permute.xlu0 %1099  ;;  %v2151_v46 = vsel %vm643_vm3, %v3307_v44, %v2039_v22 }
  0xd4   : > { %639 = vrot.lane.b32.xlu1 %v607_v61, %s3398_s28  ;;  %v1212_v40 = vsel %vm643_vm3, %v3306_v39, %v1100_v33 }
  0xd5   : > { %560 = vrot.lane.b32.xlu0 %v529_v26, %s3399_s29 }
  0xd6   : > { %v1180_v51 = vpop.permute.xlu1 %1179 }
  0xd7   : > { %v1244_v43 = vsel %vm676_vm4, %v1212_v40, %v1180_v51  ;;  %v1102_v13 = vpop.permute.xlu0 %1101  ;;  %v3314_v40 = vld [vmem:[%s3476_s27 + $0x9c] sm:$0xff]  }
  0xd8   : > { %2146 = vrot.lane.b32.xlu1 %v2114_v35, %s3398_s28  ;;  %2979 = vmatprep.mubr.msk.bf16.mxu1 %vm1267_vm5, %v1244_v43  ;;  %v1214_v1 = vsel %vm643_vm3, %v3309_v0, %v1102_v13  ;;  %v3315_v43 = vld [vmem:[%s3476_s27 + $0x48] sm:$0xff]  }
  0xd9   : > { %2068 = vrot.lane.b32.xlu0 %v2037_v42, %s3399_s29 }
  0xda   : > { %v2119_v47 = vpop.permute.xlu1 %2118 }
  0xdb   : > { %v2183_v19 = vsel %vm676_vm4, %v2151_v46, %v2119_v47  ;;  %v2041_v54 = vpop.permute.xlu0 %2040  ;;  %v3316_v47 = vld [vmem:[%s3476_s27 + $0x54] sm:$0xff]  }
  0xdc   : > { %2148 = vrot.lane.b32.xlu1 %v2117_v45, %s3398_s28  ;;  %3031 = vmatprep.mubr.msk.bf16.mxu0 %vm1267_vm5, %v2183_v19  ;;  %v2153_v60 = vsel %vm643_vm3, %v3308_v56, %v2041_v54  ;;  %v3317_v54 = vld [vmem:[%s3476_s27 + $0xa8] sm:$0xff]   ;;  %s3318_s27 = scalar_lea.vmem %s4334_s20, 32 }
  0xdd   : > { %641 = vrot.lane.b32.xlu0 %v610_v48, %s3398_s28  ;;  %p3319_p12 = scmp.ne.s32.totalorder %s4334_s20, %s3318_s27  ;;  %s3322_s28 = sshll.u32 %s3400_s12, 4  ;;  %s3323_s28 = int_to_ptr.vmem [resolvable:$false] %s3322_s28 }
  0xde   : > { %v2121_v59 = vpop.permute.xlu1 %2120  ;;  %s3324_s29 = scalar_lea.vmem %s3323_s28, 64  ;;  %p3325_p1 = scmp.lt.s32.totalorder %s4334_s20, %s3323_s28 }
  0xdf   : > { %v2185_v4 = vsel %vm676_vm4, %v2153_v60, %v2121_v59  ;;  %v1182_v5 = vpop.permute.xlu0 %1181  ;;  %p3320_p13 = pnand %p3319_p12, %p3456_p4  ;;  %p3326_p2 = scmp.lt.s32.totalorder %s3324_s29, %s3318_s27 }
  0xe0   : > { %v1246_v11 = vsel %vm676_vm4, %v1214_v1, %v1182_v5  ;;  %3032 = vmatmul.mubr.msk.bf16.vlgmr.msra.gmra.mrb[0].mxu0 %vm1267_vm5, %v2185_v4 }
  0xe1   : > { %2980 = vmatmul.mubr.msk.bf16.gmra.mrb[16].mxu1 %vm1267_vm5, %v1246_v11  ;;  %p3321_p0 = pneg %p3320_p13  ;;  %p3327_p3 = por %p3326_p2, %p3325_p1 }
  0xe2   : > { %v2043_v12 = vpop.permute.xlu1 %2042 }
  0xe3   : > { %v1104_v10 = vpop.permute.xlu0 %1103  ;;  %v2155_v17 = vsel %vm643_vm3, %v3311_v58, %v2043_v12  ;;  %p3328_p5 = pnand %p3327_p3, %p3321_p0 }
  0xe4   : > { %v1216_v57 = vsel %vm643_vm3, %v3310_v31, %v1104_v10 }
  0xe6   : > { %v1184_v34 = vpop.permute.xlu1 %1183 }
  0xe7   : > { %v1248_v15 = vsel %vm676_vm4, %v1216_v57, %v1184_v34  ;;  %v1106_v16 = vpop.permute.xlu0 %1105 }
  0xe8   : > { %2983 = vmatprep.mubr.msk.bf16.mxu1 %vm1267_vm5, %v1248_v15  ;;  %v1218_v28 = vsel %vm643_vm3, %v3313_v27, %v1106_v16 }
  0xea   : > { %v2123_v23 = vpop.permute.xlu1 %2122 }
  0xeb   : > { %v2187_v61 = vsel %vm676_vm4, %v2155_v17, %v2123_v23  ;;  %v2045_v24 = vpop.permute.xlu0 %2044 }
  0xec   : > { %3035 = vmatprep.mubr.msk.bf16.mxu0 %vm1267_vm5, %v2187_v61  ;;  %v2157_v22 = vsel %vm643_vm3, %v3312_v25, %v2045_v24 }
  0xee   : > { %v2125_v26 = vpop.permute.xlu1 %2124 }
  0xef   : > { %v2189_v33 = vsel %vm676_vm4, %v2157_v22, %v2125_v26  ;;  %v1186_v35 = vpop.permute.xlu0 %1185 }
  0xf0   : > { %v1250_v37 = vsel %vm676_vm4, %v1218_v28, %v1186_v35  ;;  %3036 = vmatmul.mubr.msk.bf16.gmra.mrb[4].mxu0 %vm1267_vm5, %v2189_v33 }
  0xf1   : > { %2984 = vmatmul.mubr.msk.bf16.gmra.mrb[20].mxu1 %vm1267_vm5, %v1250_v37 }
  0xf2   : > { %v2047_v20 = vpop.permute.xlu1 %2046 }
  0xf3   : > { %v1108_v39 = vpop.permute.xlu0 %1107  ;;  %v2159_v13 = vsel %vm643_vm3, %v3315_v43, %v2047_v20 }
  0xf4   : > { %v1220_v51 = vsel %vm643_vm3, %v3314_v40, %v1108_v39 }
  0xf6   : > { %v1188_v42 = vpop.permute.xlu1 %1187 }
  0xf7   : > { %v1252_v52 = vsel %vm676_vm4, %v1220_v51, %v1188_v42  ;;  %v1110_v49 = vpop.permute.xlu0 %1109 }
  0xf8   : > { %2987 = vmatprep.mubr.msk.bf16.mxu1 %vm1267_vm5, %v1252_v52  ;;  %v1222_v56 = vsel %vm643_vm3, %v3317_v54, %v1110_v49 }
  0xfa   : > { %v2127_v45 = vpop.permute.xlu1 %2126 }
  0xfb   : > { %v2191_v44 = vsel %vm676_vm4, %v2159_v13, %v2127_v45  ;;  %v2049_v46 = vpop.permute.xlu0 %2048 }
  0xfc   : > { %3039 = vmatprep.mubr.msk.bf16.mxu0 %vm1267_vm5, %v2191_v44  ;;  %v2161_v48 = vsel %vm643_vm3, %v3316_v47, %v2049_v46 }
  0xfe   : > { %v2129_v19 = vpop.permute.xlu1 %2128 }
  0xff   : > { %v2193_v60 = vsel %vm676_vm4, %v2161_v48, %v2129_v19  ;;  %v1190_v59 = vpop.permute.xlu0 %1189 }
 0x100   : > { %v1254_v0 = vsel %vm676_vm4, %v1222_v56, %v1190_v59  ;;  %3040 = vmatmul.mubr.msk.bf16.gmra.mrb[8].mxu0 %vm1267_vm5, %v2193_v60 }
 0x101   : > { %2988 = vmatmul.mubr.msk.bf16.gmra.mrb[24].mxu1 %vm1267_vm5, %v1254_v0 }
 0x102   : > { %v2051_v1 = vpop.permute.xlu1 %2050 }
 0x103   : > { %v1112_v4 = vpop.permute.xlu0 %1111  ;;  %v2163_v31 = vsel %vm643_vm3, %v3804_v3, %v2051_v1 }
 0x104   : > { %v1224_v5 = vsel %vm643_vm3, %v3807_v7, %v1112_v4 }
 0x106   : > { %v1192_v11 = vpop.permute.xlu1 %1191 }
 0x107   : > { %v1256_v12 = vsel %vm676_vm4, %v1224_v5, %v1192_v11  ;;  %v1114_v10 = vpop.permute.xlu0 %1113 }
 0x108   : > { %2991 = vmatprep.mubr.msk.bf16.mxu1 %vm1267_vm5, %v1256_v12  ;;  %v1226_v7 = vsel %vm643_vm3, %v3824_v18, %v1114_v10 }
 0x10a   : > { %v2131_v57 = vpop.permute.xlu1 %2130 }
 0x10b   : > { %v2195_v34 = vsel %vm676_vm4, %v2163_v31, %v2131_v57  ;;  %v2053_v15 = vpop.permute.xlu0 %2052 }
 0x10c   : > { %3043 = vmatprep.mubr.msk.bf16.mxu0 %vm1267_vm5, %v2195_v34  ;;  %v2165_v16 = vsel %vm643_vm3, %v3839_v29, %v2053_v15 }
 0x10e   : > { %v2133_v58 = vpop.permute.xlu1 %2132 }
 0x10f   : > { %v2197_v17 = vsel %vm676_vm4, %v2165_v16, %v2133_v58  ;;  %v1194_v23 = vpop.permute.xlu0 %1193 }
 0x110   : > { %v1258_v61 = vsel %vm676_vm4, %v1226_v7, %v1194_v23  ;;  %3044 = vmatmul.mubr.msk.bf16.gmra.mrb[12].mxu0 %vm1267_vm5, %v2197_v17 }
 0x111   : > { %2992 = vmatmul.mubr.msk.bf16.gmra.mrb[28].mxu1 %vm1267_vm5, %v1258_v61 }
 0x112   : > { %v2055_v3 = vpop.permute.xlu1 %2054 }
 0x113   : > { %v547_v24 = vpop.permute.xlu0 %546  ;;  %v2167_v18 = vsel %vm643_vm3, %v3857_v50, %v2055_v3 }
 0x114   : > { %v661_v25 = vsel %vm643_vm3, %v3862_v53, %v547_v24 }
 0x116   : > { %v628_v22 = vpop.permute.xlu1 %627 }
 0x117   : > { %v694_v29 = vsel %vm676_vm4, %v661_v25, %v628_v22  ;;  %v549_v26 = vpop.permute.xlu0 %548 }
 0x118   : > { %3013 = vmatprep.mubr.msk.bf16.mxu1 %vm1267_vm5, %v694_v29  ;;  %v663_v53 = vsel %vm643_vm3, %v3883_v8, %v549_v26 }
 0x11a   : > { %v2135_v27 = vpop.permute.xlu1 %2134 }
 0x11b   : > { %v2199_v28 = vsel %vm676_vm4, %v2167_v18, %v2135_v27  ;;  %v2057_v33 = vpop.permute.xlu0 %2056 }
 0x11c   : > { %3047 = vmatprep.mubr.msk.bf16.mxu0 %vm1267_vm5, %v2199_v28  ;;  %v2169_v35 = vsel %vm643_vm3, %v3895_v21, %v2057_v33 }
 0x11e   : > { %v2137_v37 = vpop.permute.xlu1 %2136 }
 0x11f   : > { %v2201_v20 = vsel %vm676_vm4, %v2169_v35, %v2137_v37  ;;  %v630_v39 = vpop.permute.xlu0 %629 }
 0x120   : > { %v696_v40 = vsel %vm676_vm4, %v663_v53, %v630_v39  ;;  %3048 = vmatmul.mubr.msk.bf16.gmra.mrb[16].mxu0 %vm1267_vm5, %v2201_v20 }
 0x121   : > { %3014 = vmatmul.mubr.msk.bf16.vlgmr.msra.gmra.mrb[16].mxu1 %vm1267_vm5, %v696_v40 }
 0x122   : > { %v2059_v50 = vpop.permute.xlu1 %2058 }
 0x123   : > { %v551_v51 = vpop.permute.xlu0 %550  ;;  %v2171_v8 = vsel %vm643_vm3, %v3927_v55, %v2059_v50 }
 0x124   : > { %v665_v42 = vsel %vm643_vm3, %v3932_v62, %v551_v51 }
 0x126   : > { %v632_v52 = vpop.permute.xlu1 %631 }
 0x127   : > { %v698_v21 = vsel %vm676_vm4, %v665_v42, %v632_v52  ;;  %v553_v49 = vpop.permute.xlu0 %552 }
 0x128   : > { %3017 = vmatprep.mubr.msk.bf16.mxu1 %vm1267_vm5, %v698_v21  ;;  %v667_v62 = vsel %vm643_vm3, %v3955_v9, %v553_v49 }
 0x12a   : > { %v2139_v43 = vpop.permute.xlu1 %2138 }
 0x12b   : > { %v2203_v13 = vsel %vm676_vm4, %v2171_v8, %v2139_v43  ;;  %v2061_v45 = vpop.permute.xlu0 %2060 }
 0x12c   : > { %3051 = vmatprep.mubr.msk.bf16.mxu0 %vm1267_vm5, %v2203_v13  ;;  %v2173_v44 = vsel %vm643_vm3, %v3985_v41, %v2061_v45 }
 0x12e   : > { %v2141_v46 = vpop.permute.xlu1 %2140 }
 0x12f   : > { %v2205_v47 = vsel %vm676_vm4, %v2173_v44, %v2141_v46  ;;  %v634_v48 = vpop.permute.xlu0 %633 }
 0x130   : > { %v700_v19 = vsel %vm676_vm4, %v667_v62, %v634_v48  ;;  %3052 = vmatmul.mubr.msk.bf16.gmra.mrb[20].mxu0 %vm1267_vm5, %v2205_v47 }
 0x131   : > { %3018 = vmatmul.mubr.msk.bf16.gmra.mrb[20].mxu1 %vm1267_vm5, %v700_v19 }
 0x132   : > { %v2063_v55 = vpop.permute.xlu1 %2062 }
 0x133   : > { %v555_v54 = vpop.permute.xlu0 %554  ;;  %v2175_v9 = vsel %vm643_vm3, %v4007_v6, %v2063_v55 }
 0x134   : > { %v669_v56 = vsel %vm643_vm3, %v4013_v14, %v555_v54 }
 0x136   : > { %v636_v60 = vpop.permute.xlu1 %635 }
 0x137   : > { %v702_v41 = vsel %vm676_vm4, %v669_v56, %v636_v60  ;;  %v557_v59 = vpop.permute.xlu0 %556 }
 0x138   : > { %3021 = vmatprep.mubr.msk.bf16.mxu1 %vm1267_vm5, %v702_v41  ;;  %v671_v14 = vsel %vm643_vm3, %v4039_v36, %v557_v59 }
 0x13a   : > { %v2143_v0 = vpop.permute.xlu1 %2142 }
 0x13b   : > { %v2207_v1 = vsel %vm676_vm4, %v2175_v9, %v2143_v0  ;;  %v2065_v4 = vpop.permute.xlu0 %2064 }
 0x13c   : > { %3055 = vmatprep.mubr.msk.bf16.mxu0 %vm1267_vm5, %v2207_v1  ;;  %v2177_v5 = vsel %vm643_vm3, %v4061_v2, %v2065_v4 }
 0x13e   : > { %v2145_v11 = vpop.permute.xlu1 %2144 }
 0x13f   : > { %v2209_v12 = vsel %vm676_vm4, %v2177_v5, %v2145_v11  ;;  %v638_v10 = vpop.permute.xlu0 %637 }
 0x140   : > { %v704_v31 = vsel %vm676_vm4, %v671_v14, %v638_v10  ;;  %3056 = vmatmul.mubr.msk.bf16.gmra.mrb[24].mxu0 %vm1267_vm5, %v2209_v12 }
 0x141   : > { %3022 = vmatmul.mubr.msk.bf16.gmra.mrb[24].mxu1 %vm1267_vm5, %v704_v31 }
 0x142   : > { %v2067_v6 = vpop.permute.xlu1 %2066 }
 0x143   : > { %v559_v57 = vpop.permute.xlu0 %558  ;;  %v2179_v36 = vsel %vm643_vm3, %v4083_v32, %v2067_v6 }
 0x144   : > { %v673_v34 = vsel %vm643_vm3, %v4089_v38, %v559_v57 }
 0x146   : > { %v640_v15 = vpop.permute.xlu1 %639 }
 0x147   : > { %v706_v2 = vsel %vm676_vm4, %v673_v34, %v640_v15  ;;  %v561_v16 = vpop.permute.xlu0 %560 }
 0x148   : > { %3025 = vmatprep.mubr.msk.bf16.mxu1 %vm1267_vm5, %v706_v2  ;;  %v675_v38 = vsel %vm643_vm3, %v4115_v63, %v561_v16 }
 0x14a   : > { %v2147_v58 = vpop.permute.xlu1 %2146 }
 0x14b   : > { %v2211_v7 = vsel %vm676_vm4, %v2179_v36, %v2147_v58  ;;  %v2069_v17 = vpop.permute.xlu0 %2068 }
 0x14c   : > { %3059 = vmatprep.mubr.msk.bf16.mxu0 %vm1267_vm5, %v2211_v7  ;;  %v2181_v23 = vsel %vm643_vm3, %v4137_v30, %v2069_v17 }
 0x14e   : > { %v2149_v61 = vpop.permute.xlu1 %2148 }
 0x14f   : > { %v2213_v3 = vsel %vm676_vm4, %v2181_v23, %v2149_v61  ;;  %v642_v24 = vpop.permute.xlu0 %641 }
 0x150   : > { %v708_v25 = vsel %vm676_vm4, %v675_v38, %v642_v24  ;;  %3060 = vmatmul.mubr.msk.bf16.gmra.mrb[28].mxu0 %vm1267_vm5, %v2213_v3 }
 0x151   : > { %3026 = vmatmul.mubr.msk.bf16.gmra.mrb[28].mxu1 %vm1267_vm5, %v708_v25 }
 0x175   : > { %v2965_v32 = vpop.f32.mrb[0].mxu1 }
 0x176   : > { %v1338_v22 = vpop.f32.mrb[1].mxu1 }
 0x177   : > { %v2966_v29 = vpop.f32.mrb[2].mxu1 }
 0x178   : > { %v1341_v26 = vpop.f32.mrb[3].mxu1 }
 0x183   : > { %v2969_v18 = vpop.f32.mrb[4].mxu1 }
 0x184   : > { %v1354_v27 = vpop.f32.mrb[5].mxu1 }
 0x185   : > { %v2970_v30 = vpop.f32.mrb[6].mxu1 }
 0x186   : > { %v1357_v28 = vpop.f32.mrb[7].mxu1 }
 0x193   : > { %v2973_v33 = vpop.f32.mrb[8].mxu1 }
 0x194   : > { %v1370_v35 = vpop.f32.mrb[9].mxu1 }
 0x195   : > { %v2974_v63 = vpop.f32.mrb[10].mxu1 }
 0x196   : > { %v1373_v37 = vpop.f32.mrb[11].mxu1 }
 0x1a3   : > { %v4315_v53 = vpop.f32.mrb[12].mxu1 }
 0x1a4   : > { %v4317_v20 = vpop.f32.mrb[13].mxu1 }
 0x1a5   : > { %v4319_v39 = vpop.f32.mrb[14].mxu1 }
 0x1a6   : > { %v4321_v40 = vpop.f32.mrb[15].mxu1 }
 0x1b3   : > { %v3033_v50 = vpop.f32.mrb[0].mxu0 }
 0x1b4   : > { %v3065_v51 = vadd.f32 %v3033_v50, %v2965_v32  ;;  %v2291_v42 = vpop.f32.mrb[1].mxu0 }
 0x1b5   : > { %v3066_v52 = vadd.f32 %v2291_v42, %v1338_v22  ;;  %v3034_v21 = vpop.f32.mrb[2].mxu0 }
 0x1b6   : > { %v3067_v49 = vadd.f32 %v3034_v21, %v2966_v29  ;;  %v2294_v8 = vpop.f32.mrb[3].mxu0  ;;  %v2489_v46 = vmul.f32 %v3065_v51, %v3065_v51 }
 0x1b7   : > { %v3068_v43 = vadd.f32 %v2294_v8, %v1341_v26  ;;  %v2487_v13 = vmul.f32 %v3066_v52, %v3066_v52 }
 0x1b8   : > { %v2490_v48 = vmul.f32 %v3067_v49, %v3067_v49 }
 0x1b9   : > { %v2450_v45 = vadd.f32 %v3068_v43, %v3066_v52  ;;  %v2488_v44 = vmul.f32 %v3068_v43, %v3068_v43 }
 0x1bb   : > { %v2451_v62 = vadd.f32 %v3065_v51, %v2450_v45  ;;  %v2519_v47 = vadd.f32 %v2488_v44, %v2487_v13 }
 0x1bd   : > { %v2520_v19 = vadd.f32 %v2519_v47, %v2489_v46  ;;  %v2452_v55 = vadd.f32 %v3067_v49, %v2451_v62 }
 0x1bf   : > { %v2521_v54 = vadd.f32 %v2520_v19, %v2490_v48 }
 0x1c3   : > { %v3037_v56 = vpop.f32.mrb[4].mxu0 }
 0x1c4   : > { %v3069_v60 = vadd.f32 %v3037_v56, %v2969_v18  ;;  %v2307_v41 = vpop.f32.mrb[5].mxu0 }
 0x1c5   : > { %v3070_v59 = vadd.f32 %v2307_v41, %v1354_v27  ;;  %v3038_v9 = vpop.f32.mrb[6].mxu0 }
 0x1c6   : > { %v3071_v0 = vadd.f32 %v3038_v9, %v2970_v30  ;;  %v2310_v1 = vpop.f32.mrb[7].mxu0  ;;  %v2493_v31 = vmul.f32 %v3069_v60, %v3069_v60 }
 0x1c7   : > { %v2453_v4 = vadd.f32 %v3070_v59, %v2452_v55  ;;  %v2491_v5 = vmul.f32 %v3070_v59, %v3070_v59  ;;  %v3072_v11 = vadd.f32 %v2310_v1, %v1357_v28 }
 0x1c8   : > { %v2494_v34 = vmul.f32 %v3071_v0, %v3071_v0 }
 0x1c9   : > { %v2522_v14 = vadd.f32 %v2521_v54, %v2491_v5  ;;  %v2454_v12 = vadd.f32 %v3072_v11, %v2453_v4  ;;  %v2492_v10 = vmul.f32 %v3072_v11, %v3072_v11 }
 0x1cb   : > { %v2455_v6 = vadd.f32 %v3069_v60, %v2454_v12  ;;  %v2523_v57 = vadd.f32 %v2522_v14, %v2492_v10 }
 0x1cd   : > { %v2524_v15 = vadd.f32 %v2523_v57, %v2493_v31  ;;  %v2456_v2 = vadd.f32 %v3071_v0, %v2455_v6 }
 0x1cf   : > { %v2525_v16 = vadd.f32 %v2524_v15, %v2494_v34 }
 0x1d3   : > { %v3041_v36 = vpop.f32.mrb[8].mxu0 }
 0x1d4   : > { %v3073_v58 = vadd.f32 %v3041_v36, %v2973_v33  ;;  %v2323_v7 = vpop.f32.mrb[9].mxu0 }
 0x1d5   : > { %v3074_v17 = vadd.f32 %v2323_v7, %v1370_v35  ;;  %v3042_v23 = vpop.f32.mrb[10].mxu0 }
 0x1d6   : > { %v3075_v61 = vadd.f32 %v3042_v23, %v2974_v63  ;;  %v2326_v38 = vpop.f32.mrb[11].mxu0  ;;  %v2497_v26 = vmul.f32 %v3073_v58, %v3073_v58 }
 0x1d7   : > { %v2457_v3 = vadd.f32 %v3074_v17, %v2456_v2  ;;  %v2495_v24 = vmul.f32 %v3074_v17, %v3074_v17  ;;  %v3076_v25 = vadd.f32 %v2326_v38, %v1373_v37 }
 0x1d8   : > { %v2498_v30 = vmul.f32 %v3075_v61, %v3075_v61 }
 0x1d9   : > { %v2526_v32 = vadd.f32 %v2525_v16, %v2495_v24  ;;  %v2458_v22 = vadd.f32 %v3076_v25, %v2457_v3  ;;  %v2496_v29 = vmul.f32 %v3076_v25, %v3076_v25 }
 0x1db   : > { %v2459_v18 = vadd.f32 %v3073_v58, %v2458_v22  ;;  %v2527_v27 = vadd.f32 %v2526_v32, %v2496_v29 }
 0x1dd   : > { %v2528_v28 = vadd.f32 %v2527_v27, %v2497_v26  ;;  %v2460_v50 = vadd.f32 %v3075_v61, %v2459_v18 }
 0x1df   : > { %v2529_v51 = vadd.f32 %v2528_v28, %v2498_v30 }
 0x1e3   : > { %v3045_v42 = vpop.f32.mrb[12].mxu0 }
 0x1e4   : > { %v3077_v33 = vadd.f32 %v3045_v42, %v4315_v53  ;;  %v2339_v35 = vpop.f32.mrb[13].mxu0 }
 0x1e5   : > { %v3078_v63 = vadd.f32 %v2339_v35, %v4317_v20  ;;  %v3046_v52 = vpop.f32.mrb[14].mxu0 }
 0x1e6   : > { %v3079_v21 = vadd.f32 %v3046_v52, %v4319_v39  ;;  %v2342_v37 = vpop.f32.mrb[15].mxu0  ;;  %v2501_v46 = vmul.f32 %v3077_v33, %v3077_v33 }
 0x1e7   : > { %v2461_v49 = vadd.f32 %v3078_v63, %v2460_v50  ;;  %v2499_v8 = vmul.f32 %v3078_v63, %v3078_v63  ;;  %v3080_v43 = vadd.f32 %v2342_v37, %v4321_v40 }
 0x1e8   : > { %v2502_v48 = vmul.f32 %v3079_v21, %v3079_v21 }
 0x1e9   : > { %v2530_v13 = vadd.f32 %v2529_v51, %v2499_v8  ;;  %v2462_v45 = vadd.f32 %v3080_v43, %v2461_v49  ;;  %v2500_v44 = vmul.f32 %v3080_v43, %v3080_v43 }
 0x1eb   : > { %v2463_v62 = vadd.f32 %v3077_v33, %v2462_v45  ;;  %v2531_v47 = vadd.f32 %v2530_v13, %v2500_v44 }
 0x1ed   : > { %v2532_v19 = vadd.f32 %v2531_v47, %v2501_v46  ;;  %v2464_v53 = vadd.f32 %v3079_v21, %v2463_v62 }
 0x1ef   : > { %v2533_v55 = vadd.f32 %v2532_v19, %v2502_v48 }
 0x1f3   : > { %v3049_v54 = vpop.f32.mrb[16].mxu0 }
 0x1f4   : > { %v3015_v20 = vpop.f32.mrb[16].mxu1  ;;  %v2355_v56 = vpop.f32.mrb[17].mxu0 }
 0x1f5   : > { %v3081_v60 = vadd.f32 %v3049_v54, %v3015_v20  ;;  %v1603_v39 = vpop.f32.mrb[17].mxu1  ;;  %v3050_v41 = vpop.f32.mrb[18].mxu0 }
 0x1f6   : > { %v3082_v59 = vadd.f32 %v2355_v56, %v1603_v39  ;;  %v3016_v9 = vpop.f32.mrb[18].mxu1  ;;  %v2358_v0 = vpop.f32.mrb[19].mxu0 }
 0x1f7   : > { %v3083_v40 = vadd.f32 %v3050_v41, %v3016_v9  ;;  %v1606_v1 = vpop.f32.mrb[19].mxu1  ;;  %v2505_v31 = vmul.f32 %v3081_v60, %v3081_v60 }
 0x1f8   : > { %v2465_v4 = vadd.f32 %v3082_v59, %v2464_v53  ;;  %v2503_v5 = vmul.f32 %v3082_v59, %v3082_v59  ;;  %v3084_v11 = vadd.f32 %v2358_v0, %v1606_v1 }
 0x1f9   : > { %v2506_v34 = vmul.f32 %v3083_v40, %v3083_v40 }
 0x1fa   : > { %v2534_v14 = vadd.f32 %v2533_v55, %v2503_v5  ;;  %v2466_v12 = vadd.f32 %v3084_v11, %v2465_v4  ;;  %v2504_v10 = vmul.f32 %v3084_v11, %v3084_v11 }
 0x1fc   : > { %v2467_v6 = vadd.f32 %v3081_v60, %v2466_v12  ;;  %v2535_v57 = vadd.f32 %v2534_v14, %v2504_v10 }
 0x1fe   : > { %v2536_v15 = vadd.f32 %v2535_v57, %v2505_v31  ;;  %v2468_v2 = vadd.f32 %v3083_v40, %v2467_v6 }
 0x200   : > { %v2537_v16 = vadd.f32 %v2536_v15, %v2506_v34 }
 0x203   : > { %v3053_v36 = vpop.f32.mrb[20].mxu0 }
 0x204   : > { %v3019_v58 = vpop.f32.mrb[20].mxu1  ;;  %v2371_v7 = vpop.f32.mrb[21].mxu0 }
 0x205   : > { %v3085_v17 = vadd.f32 %v3053_v36, %v3019_v58  ;;  %v1619_v23 = vpop.f32.mrb[21].mxu1  ;;  %v3054_v61 = vpop.f32.mrb[22].mxu0 }
 0x206   : > { %v3086_v38 = vadd.f32 %v2371_v7, %v1619_v23  ;;  %v3020_v3 = vpop.f32.mrb[22].mxu1  ;;  %v2374_v24 = vpop.f32.mrb[23].mxu0 }
 0x207   : > { %v3087_v25 = vadd.f32 %v3054_v61, %v3020_v3  ;;  %v1622_v32 = vpop.f32.mrb[23].mxu1  ;;  %v2509_v28 = vmul.f32 %v3085_v17, %v3085_v17 }
 0x208   : > { %v2469_v22 = vadd.f32 %v3086_v38, %v2468_v2  ;;  %v2507_v29 = vmul.f32 %v3086_v38, %v3086_v38  ;;  %v3088_v26 = vadd.f32 %v2374_v24, %v1622_v32 }
 0x209   : > { %v2510_v42 = vmul.f32 %v3087_v25, %v3087_v25 }
 0x20a   : > { %v2538_v18 = vadd.f32 %v2537_v16, %v2507_v29  ;;  %v2470_v27 = vadd.f32 %v3088_v26, %v2469_v22  ;;  %v2508_v30 = vmul.f32 %v3088_v26, %v3088_v26 }
 0x20c   : > { %v2471_v50 = vadd.f32 %v3085_v17, %v2470_v27  ;;  %v2539_v51 = vadd.f32 %v2538_v18, %v2508_v30 }
 0x20e   : > { %v2540_v33 = vadd.f32 %v2539_v51, %v2509_v28  ;;  %v2472_v35 = vadd.f32 %v3087_v25, %v2471_v50 }
 0x210   : > { %v2541_v63 = vadd.f32 %v2540_v33, %v2510_v42 }
 0x213   : > { %v3057_v52 = vpop.f32.mrb[24].mxu0 }
 0x214   : > { %v3023_v21 = vpop.f32.mrb[24].mxu1  ;;  %v2387_v37 = vpop.f32.mrb[25].mxu0 }
 0x215   : > { %v3089_v49 = vadd.f32 %v3057_v52, %v3023_v21  ;;  %v1635_v8 = vpop.f32.mrb[25].mxu1  ;;  %v3058_v43 = vpop.f32.mrb[26].mxu0 }
 0x216   : > { %v3090_v13 = vadd.f32 %v2387_v37, %v1635_v8  ;;  %v3024_v45 = vpop.f32.mrb[26].mxu1  ;;  %v2390_v44 = vpop.f32.mrb[27].mxu0 }
 0x217   : > { %v3091_v46 = vadd.f32 %v3058_v43, %v3024_v45  ;;  %v1638_v62 = vpop.f32.mrb[27].mxu1  ;;  %v2513_v20 = vmul.f32 %v3089_v49, %v3089_v49 }
 0x218   : > { %v2473_v47 = vadd.f32 %v3090_v13, %v2472_v35  ;;  %v2511_v48 = vmul.f32 %v3090_v13, %v3090_v13  ;;  %v3092_v19 = vadd.f32 %v2390_v44, %v1638_v62 }
 0x219   : > { %v2514_v39 = vmul.f32 %v3091_v46, %v3091_v46 }
 0x21a   : > { %v2542_v53 = vadd.f32 %v2541_v63, %v2511_v48  ;;  %v2474_v55 = vadd.f32 %v3092_v19, %v2473_v47  ;;  %v2512_v54 = vmul.f32 %v3092_v19, %v3092_v19 }
 0x21c   : > { %v2475_v56 = vadd.f32 %v3089_v49, %v2474_v55  ;;  %v2543_v60 = vadd.f32 %v2542_v53, %v2512_v54 }
 0x21e   : > { %v2544_v41 = vadd.f32 %v2543_v60, %v2513_v20  ;;  %v2476_v59 = vadd.f32 %v3091_v46, %v2475_v56 }
 0x220   : > { %v2545_v9 = vadd.f32 %v2544_v41, %v2514_v39 }
 0x223   : > { %v3061_v0 = vpop.f32.mrb[28].mxu0 }
 0x224   : > { %v3027_v40 = vpop.f32.mrb[28].mxu1  ;;  %v2403_v1 = vpop.f32.mrb[29].mxu0 }
 0x225   : > { %v3093_v4 = vadd.f32 %v3061_v0, %v3027_v40  ;;  %v1651_v5 = vpop.f32.mrb[29].mxu1  ;;  %v3062_v11 = vpop.f32.mrb[30].mxu0 }
 0x226   : > { %v3094_v14 = vadd.f32 %v2403_v1, %v1651_v5  ;;  %v3028_v12 = vpop.f32.mrb[30].mxu1  ;;  %v2406_v10 = vpop.f32.mrb[31].mxu0 }
 0x227   : > { %v3095_v31 = vadd.f32 %v3062_v11, %v3028_v12  ;;  %v1654_v6 = vpop.f32.mrb[31].mxu1  ;;  %v2517_v58 = vmul.f32 %v3093_v4, %v3093_v4 }
 0x228   : > { %v2477_v57 = vadd.f32 %v3094_v14, %v2476_v59  ;;  %v2515_v34 = vmul.f32 %v3094_v14, %v3094_v14  ;;  %v3096_v15 = vadd.f32 %v2406_v10, %v1654_v6 }
 0x229   : > { %v2518_v23 = vmul.f32 %v3095_v31, %v3095_v31 }
 0x22a   : > { %v2546_v2 = vadd.f32 %v2545_v9, %v2515_v34  ;;  %v2478_v16 = vadd.f32 %v3096_v15, %v2477_v57  ;;  %v2516_v36 = vmul.f32 %v3096_v15, %v3096_v15 }
 0x22c   : > { %v2479_v7 = vadd.f32 %v3093_v4, %v2478_v16  ;;  %v2547_v17 = vadd.f32 %v2546_v2, %v2516_v36 }
 0x22e   : > { %v2480_v61 = vadd.f32 %v3095_v31, %v2479_v7  ;;  %v2548_v38 = vadd.f32 %v2547_v17, %v2517_v58 }
 0x230   : > { %v2481_v3 = vrot.slane %v2480_v61, 4  ;;  %v2549_v24 = vadd.f32 %v2548_v38, %v2518_v23 }
 0x232   : > { %v2482_v25 = vadd.f32 %v2481_v3, %v2480_v61  ;;  %v2550_v32 = vrot.slane %v2549_v24, 4 }
 0x234   : > { %v2483_v22 = vrot.slane %v2482_v25, 2  ;;  %v2551_v29 = vadd.f32 %v2550_v32, %v2549_v24 }
 0x236   : > { %v2484_v26 = vadd.f32 %v2483_v22, %v2482_v25  ;;  %v2552_v18 = vrot.slane %v2551_v29, 2 }
 0x238   : > { %v2485_v27 = vrot.slane %v2484_v26, 1  ;;  %v2553_v30 = vadd.f32 %v2552_v18, %v2551_v29 }
 0x23a   : > { %v2554_v28 = vrot.slane %v2553_v30, 1  ;;  %v2486_v50 = vadd.f32 %v2485_v27, %v2484_v26 }
 0x23c   : > { %v2555_v51 = vadd.f32 %v2554_v28, %v2553_v30 }
 0x23e   : > { %v2557_v42 = vsel %vm2556_vm6, %v2486_v50, %v2555_v51 }
 0x23f   : > { %2558 = vst [vmem:[%s150_s18] sm:$0x3] %v2557_v42 }
 0x240   : > { %3331 = shalt.err (!%p3328_p5)
}
 0x241   : > { %s3332_s30 = scalar_lea.hbm %s4332_s25, 32  ;;  %s3336_s5 = scalar_lea.hbm %s4381_s2, 64 }
 0x242   : > { %p3333_p6 = scmp.ne.s32.totalorder %s4332_s25, %s3332_s30  ;;  %p3337_p10 = scmp.lt.u32.totalorder %s4332_s25, %s4381_s2 }
 0x243   : > { %p3338_p11 = scmp.lt.u32.totalorder %s3336_s5, %s3332_s30  ;;  %p3340_p13 = scmp.lt.u32.totalorder %s3332_s30, %s4332_s25 }
 0x244   : > { %p3334_p7 = pnand %p3333_p6, %p3456_p4 }
 0x245   : > { %p3339_p12 = por %p3338_p11, %p3337_p10 }
 0x246   : > { %p3335_p9 = pneg %p3334_p7 }
 0x247   : > { %p3341_p0 = por %p3340_p13, %p3339_p12 }
 0x249   : > { %p3342_p1 = pnand %p3341_p0, %p3335_p9 }
 0x24b   : > { %3345 = shalt.err (!%p3342_p1)
}
 0x24c   : > { %3134 = dma.vmem_to_hbm [thread:$0]  (%p3456_p4), %s4334_s20, 32, %s4332_s25, %s2560_s26  }
 0x24d PF: > { %p3140_p2 = scmp.ge.s32.totalorder %s3396_s14, 2  ;;  %s2586_s8 = sand.u32 1, %s3376_s9  }
 0x24e   : > { %s2587_s15 = scalar_lea.sflag [#allocation3], %s2586_s8 }
 0x24f   : > { %p3137_p3 = pnand %p3140_p2, %p3463_p8 }
 0x251   : > { %3371 = dma.done.wait (!%p3137_p3), %s2587_s15, 32  }
 0x252   : > { %3373 = vsyncadd (!%p3137_p3), %s2587_s15, 4294967264  ;;  %s15_s14 = sadd.s32 1, %s3396_s14   ;;  %s4384_s9 = smov %s3380_s10 }
 0x253   : > { %p12_p5 = scmp.ge.s32.totalorder %s15_s14, 4   ;;  %s4385_s10 = smov %s3384_s11 }
 0x254   : > { %s4386_s11 = smov %s3469_s22  ;;  %s4387_s12 = smov %s3392_s13 }
 0x255   : > { %s4388_s13 = smov %s4390_s17  ;;  %14 = sbr.rel (!%p12_p5) target bundleno = 4 (0x4), region = 68 }
 0x25c   :  { %2592 = vsyncpa [#allocation3], 1 }
 0x25d   :  { %2594 = vsyncpa [#allocation3 + $0x1], 1 }

</bundles_post_ra>
